<compile_context>
chip_gen: v7x
topology: tpu7x:2x2x1
jax: 0.10.0
libtpu: 0.0.40
codegen_flags: <defaults>
</compile_context>

<pallas_src>
import functools

import jax
import jax.numpy as jnp
from jax.experimental import pallas as pl
from jax.experimental.pallas import tpu as pltpu


# --------------------------------------------------------------------------
# Helpers
# --------------------------------------------------------------------------
def _layernorm(x, w, b, eps=1e-5):
    mu = jnp.mean(x, axis=-1, keepdims=True)
    var = jnp.mean((x - mu) ** 2, axis=-1, keepdims=True)
    return (x - mu) * jax.lax.rsqrt(var + eps) * w + b


# --------------------------------------------------------------------------
# Kernel 1: LN1 + fused QKV projection, emitting head-major q/v and
#           pre-transposed K (grid over batch x sequence tiles).
# --------------------------------------------------------------------------
def _ln_qkv_kernel(x_ref, ln1w_ref, ln1b_ref, wqkv_ref, bqkv_ref,
                   q_ref, kt_ref, v_ref, *, num_heads, head_dim):
    x = x_ref[...].astype(jnp.float32)                       # [ts, D]
    D = x.shape[-1]
    xn = _layernorm(x, ln1w_ref[...], ln1b_ref[...])
    qkv = jnp.dot(xn.astype(jnp.bfloat16), wqkv_ref[...],
                  preferred_element_type=jnp.float32) + bqkv_ref[...]

    scale = 1.0 / (head_dim ** 0.5)
    q_all = qkv[:, 0:D] * scale                              # scale folded here
    k_all = qkv[:, D:2 * D]
    v_all = qkv[:, 2 * D:3 * D]

    # Per-head relayout (static unroll, XLU work) — avoids a wrapper-side XLA
    # transpose pass over q/k/v in HBM.
    for h in range(num_heads):
        lo, hi = h * head_dim, (h + 1) * head_dim
        q_ref[h] = q_all[:, lo:hi].astype(q_ref.dtype)       # [ts, hd]
        kt_ref[h] = k_all[:, lo:hi].T.astype(kt_ref.dtype)   # [hd, ts] lane-dense
        v_ref[h] = v_all[:, lo:hi].astype(v_ref.dtype)       # [ts, hd]


# --------------------------------------------------------------------------
# Kernel 2: flash attention (online softmax over kv tiles) fused with
#           out-projection + residual + LN2 + MLP + residual.
# grid = (B, num_q_tiles, num_kv_tiles); kv axis is the reduction.
# --------------------------------------------------------------------------
def _attn_mlp_kernel(x_ref, q_ref, kt_ref, v_ref,
                     wo_ref, bo_ref, g1_ref,
                     ln2w_ref, ln2b_ref,
                     w1_ref, b1_ref, w2_ref, b2_ref, g2_ref,
                     o_ref,
                     m_sc, l_sc, acc_sc,
                     *, num_heads, head_dim):
    kv = pl.program_id(2)

    @pl.when(kv == 0)
    def _():
        m_sc[...] = jnp.full(m_sc.shape, -jnp.inf, m_sc.dtype)
        l_sc[...] = jnp.zeros(l_sc.shape, l_sc.dtype)
        acc_sc[...] = jnp.zeros(acc_sc.shape, acc_sc.dtype)

    # ---- online softmax on a [H, tq, tk] score tile ------------------------
    # q is pre-scaled by 1/sqrt(hd); K is pre-transposed so no per-step
    # relayout is needed and the K tile is lane-dense.
    s = jnp.einsum("hqd,hdk->hqk", q_ref[...], kt_ref[...],
                   preferred_element_type=jnp.float32)
    m_prev = m_sc[...]
    m_new = jnp.maximum(m_prev, jnp.max(s, axis=-1, keepdims=True))
    alpha = jnp.exp(m_prev - m_new)
    p = jnp.exp(s - m_new)
    l_sc[...] = alpha * l_sc[...] + jnp.sum(p, axis=-1, keepdims=True)
    acc_sc[...] = alpha * acc_sc[...] + jnp.einsum(
        "hqk,hkd->hqd", p.astype(jnp.bfloat16), v_ref[...],
        preferred_element_type=jnp.float32)
    m_sc[...] = m_new

    # ---- finalize: out-proj + residual + LN2 + MLP + residual ---------------
    @pl.when(kv == pl.num_programs(2) - 1)
    def _():
        inv_l = pl.reciprocal(l_sc[...], approx=True)        # [H, tq, 1]
        heads = acc_sc[...] * inv_l                          # [H, tq, hd] f32

        # head-major -> embed-major relayout in VMEM (lane concat), then ONE
        # [tq, D] @ [D, D] matmul (full K=D contraction on the MXU).
        attn = jnp.concatenate(
            [heads[h] for h in range(num_heads)], axis=-1)   # [tq, D]
        proj = jnp.dot(attn.astype(jnp.bfloat16), wo_ref[...],
                       preferred_element_type=jnp.float32) + bo_ref[...]

        # residual + LayerScale 1 (DropPath is identity at inference)
        x = x_ref[...].astype(jnp.float32) + g1_ref[...] * proj

        # pre-norm 2 + MLP (exact GELU, matching nn.GELU default)
        xn2 = _layernorm(x, ln2w_ref[...], ln2b_ref[...])
        h1 = jnp.dot(xn2.astype(jnp.bfloat16), w1_ref[...],
                     preferred_element_type=jnp.float32) + b1_ref[...]
        h1 = jax.nn.gelu(h1, approximate=False)
        y = jnp.dot(h1.astype(jnp.bfloat16), w2_ref[...],
                    preferred_element_type=jnp.float32) + b2_ref[...]

        # residual + LayerScale 2 -> lane-dense [tq, D] output tile
        o_ref[...] = (x + g2_ref[...] * y).astype(o_ref.dtype)


# --------------------------------------------------------------------------
# Wrapper
# --------------------------------------------------------------------------
def transformer_block(x, params, num_heads, *,
                      seq_tile=128, q_tile=128, kv_tile=128,
                      vmem_limit_bytes=48 * 1024 * 1024):
    """x: [B, S, D] float32.  params: dict of pre-transposed f32 weights."""
    B, S, D = x.shape
    H = num_heads
    hd = D // H
    F = params["w1"].shape[-1]
    assert D % H == 0
    assert S % seq_tile == 0 and S % q_tile == 0 and S % kv_tile == 0

    # bf16 MXU operands (accumulation stays f32 inside the kernels)
    wqkv = jnp.concatenate(
        [params["wq"], params["wk"], params["wv"]], axis=1).astype(jnp.bfloat16)
    bqkv = jnp.concatenate(
        [params["bq"], params["bk"], params["bv"]], axis=1).astype(jnp.float32)
    wo = params["wo"].astype(jnp.bfloat16)                   # [D, D]
    w1 = params["w1"].astype(jnp.bfloat16)
    w2 = params["w2"].astype(jnp.bfloat16)

    # ---- kernel 1: LN1 + fused QKV, head-major outputs ----------------------
    k1 = functools.partial(_ln_qkv_kernel, num_heads=H, head_dim=hd)
    q_h, k_t, v_h = pl.pallas_call(
        k1,
        out_shape=(jax.ShapeDtypeStruct((B, H, S, hd), jnp.bfloat16),   # q (scaled)
                   jax.ShapeDtypeStruct((B, H, hd, S), jnp.bfloat16),   # k^T
                   jax.ShapeDtypeStruct((B, H, S, hd), jnp.bfloat16)),  # v
        grid=(B, S // seq_tile),
        in_specs=[
            pl.BlockSpec((None, seq_tile, D), lambda b, si: (b, si, 0)),
            pl.BlockSpec((1, D), lambda b, si: (0, 0)),
            pl.BlockSpec((1, D), lambda b, si: (0, 0)),
            pl.BlockSpec((D, 3 * D), lambda b, si: (0, 0)),
            pl.BlockSpec((1, 3 * D), lambda b, si: (0, 0)),
        ],
        out_specs=(
            pl.BlockSpec((None, H, seq_tile, hd), lambda b, si: (b, 0, si, 0)),
            pl.BlockSpec((None, H, hd, seq_tile), lambda b, si: (b, 0, 0, si)),
            pl.BlockSpec((None, H, seq_tile, hd), lambda b, si: (b, 0, si, 0)),
        ),
        compiler_params=pltpu.CompilerParams(
            dimension_semantics=("parallel", "parallel"),
            vmem_limit_bytes=vmem_limit_bytes),
    )(x, params["ln1_w"], params["ln1_b"], wqkv, bqkv)

    # ---- kernel 2: flash attention + out-proj + LN2 + MLP ------------------
    k2 = functools.partial(_attn_mlp_kernel, num_heads=H, head_dim=hd)
    out = pl.pallas_call(
        k2,
        out_shape=jax.ShapeDtypeStruct((B, S, D), x.dtype),
        grid=(B, S // q_tile, S // kv_tile),
        in_specs=[
            pl.BlockSpec((None, q_tile, D), lambda b, qi, kv: (b, qi, 0)),          # x (residual)
            pl.BlockSpec((None, H, q_tile, hd), lambda b, qi, kv: (b, 0, qi, 0)),   # q (scaled)
            pl.BlockSpec((None, H, hd, kv_tile), lambda b, qi, kv: (b, 0, 0, kv)),  # k^T (lane-dense)
            pl.BlockSpec((None, H, kv_tile, hd), lambda b, qi, kv: (b, 0, kv, 0)),  # v
            pl.BlockSpec((D, D), lambda b, qi, kv: (0, 0)),                         # wo
            pl.BlockSpec((1, D), lambda b, qi, kv: (0, 0)),                         # bo
            pl.BlockSpec((1, D), lambda b, qi, kv: (0, 0)),                         # gamma1
            pl.BlockSpec((1, D), lambda b, qi, kv: (0, 0)),                         # ln2_w
            pl.BlockSpec((1, D), lambda b, qi, kv: (0, 0)),                         # ln2_b
            pl.BlockSpec((D, F), lambda b, qi, kv: (0, 0)),                         # w1
            pl.BlockSpec((1, F), lambda b, qi, kv: (0, 0)),                         # b1
            pl.BlockSpec((F, D), lambda b, qi, kv: (0, 0)),                         # w2
            pl.BlockSpec((1, D), lambda b, qi, kv: (0, 0)),                         # b2
            pl.BlockSpec((1, D), lambda b, qi, kv: (0, 0)),                         # gamma2
        ],
        out_specs=pl.BlockSpec((None, q_tile, D), lambda b, qi, kv: (b, qi, 0)),
        scratch_shapes=[
            pltpu.VMEM((H, q_tile, 1), jnp.float32),    # m (running max)
            pltpu.VMEM((H, q_tile, 1), jnp.float32),    # l (running denom)
            pltpu.VMEM((H, q_tile, hd), jnp.float32),   # acc (running numer)
        ],
        compiler_params=pltpu.CompilerParams(
            dimension_semantics=("parallel", "parallel", "arbitrary"),
            vmem_limit_bytes=vmem_limit_bytes),
    )(x, q_h, k_t, v_h, wo, params["bo"], params["gamma1"],
      params["ln2_w"], params["ln2_b"],
      w1, params["b1"], w2, params["b2"], params["gamma2"])
    return out


# --------------------------------------------------------------------------
# Pure-JAX f32 reference (for correctness check)
# --------------------------------------------------------------------------
def reference_forward(x, p, num_heads):
    def ln(t, w, b):
        mu = t.mean(-1, keepdims=True)
        var = ((t - mu) ** 2).mean(-1, keepdims=True)
        return (t - mu) / jnp.sqrt(var + 1e-5) * w + b

    B, S, D = x.shape
    hd = D // num_heads
    xn = ln(x, p["ln1_w"], p["ln1_b"])
    q = xn @ p["wq"] + p["bq"]
    k = xn @ p["wk"] + p["bk"]
    v = xn @ p["wv"] + p["bv"]
    q = q.reshape(B, S, num_heads, hd).transpose(0, 2, 1, 3) / (hd ** 0.5)
    k = k.reshape(B, S, num_heads, hd).transpose(0, 2, 1, 3)
    v = v.reshape(B, S, num_heads, hd).transpose(0, 2, 1, 3)
    s = jnp.einsum("bhqd,bhkd->bhqk", q, k)
    pattn = jax.nn.softmax(s, axis=-1)
    o = jnp.einsum("bhqk,bhkd->bhqd", pattn, v)
    o = o.transpose(0, 2, 1, 3).reshape(B, S, D)
    attn = o @ p["wo"] + p["bo"]
    x = x + p["gamma1"] * attn
    xn2 = ln(x, p["ln2_w"], p["ln2_b"])
    h = jax.nn.gelu(xn2 @ p["w1"] + p["b1"], approximate=False)
    y = h @ p["w2"] + p["b2"]
    return x + p["gamma2"] * y


# --------------------------------------------------------------------------
# Main
# --------------------------------------------------------------------------
if __name__ == "__main__":
    # Small-but-tileable demo config: batch=2, seq=256, dim=128, heads=4, ff=256
    B, S, D, H, F = 2, 256, 128, 4, 256
    init_values = 0.1  # LayerScale init (constructor arg; chosen so the attn/ffn
                       # branches are numerically visible in the check)

    key = jax.random.PRNGKey(0)
    keys = jax.random.split(key, 16)

    def w(k, shape, scale=0.05):
        return (scale * jax.random.normal(k, shape)).astype(jnp.float32)

    # PyTorch-style parameters, pre-transposed to "x @ W" layout; 1-D params
    # reshaped to (1, D)/(1, F) rows.
    params = {
        "ln1_w": jnp.ones((1, D), jnp.float32),
        "ln1_b": jnp.zeros((1, D), jnp.float32),
        "wq": w(keys[0], (D, D)),
        "wk": w(keys[1], (D, D)),
        "wv": w(keys[2], (D, D)),
        "bq": w(keys[3], (1, D), 0.02),
        "bk": w(keys[4], (1, D), 0.02),
        "bv": w(keys[5], (1, D), 0.02),
        "wo": w(keys[6], (D, D)),
        "bo": w(keys[7], (1, D), 0.02),
        "gamma1": jnp.full((1, D), init_values, jnp.float32),
        "ln2_w": jnp.ones((1, D), jnp.float32),
        "ln2_b": jnp.zeros((1, D), jnp.float32),
        "w1": w(keys[8], (D, F)),
        "b1": w(keys[9], (1, F), 0.02),
        "w2": w(keys[10], (F, D)),
        "b2": w(keys[11], (1, D), 0.02),
        "gamma2": jnp.full((1, D), init_values, jnp.float32),
    }

    x = jax.random.normal(keys[12], (B, S, D), jnp.float32)

    out = transformer_block(x, params, num_heads=H)
    out = jax.block_until_ready(out)

    ref = reference_forward(x, params, num_heads=H)
    assert out.shape == (B, S, D)
    # Kernel runs matmuls with bf16 operands (f32 accumulation); tolerance
    # reflects that vs. the pure-f32 reference.
    assert jnp.allclose(out, ref, atol=2e-2, rtol=2e-2), (
        f"max abs err {jnp.max(jnp.abs(out - ref))}"
    )

    # TODO(synk): dropout / DropPath are stochastic training-time ops; this
    # kernel implements eval-mode (identity) semantics, matching model.eval().
    # TODO(synk): key_padding_mask (attention_mask) path not implemented; the
    # kernel covers the attention_mask=None call path of the module.
    print("KERNEL_OK")
</pallas_src>

<mosaic_0001>
module attributes {stable_mosaic.version = 11 : i64} {
  func.func @_ln_qkv_kernel(%arg0: i32, %arg1: i32, %arg2: memref<1x128x128xf32, #tpu.memory_space<vmem>>, %arg3: memref<1x128xf32, #tpu.memory_space<vmem>>, %arg4: memref<1x128xf32, #tpu.memory_space<vmem>>, %arg5: memref<128x384xbf16, #tpu.memory_space<vmem>>, %arg6: memref<1x384xf32, #tpu.memory_space<vmem>>, %arg7: memref<1x4x128x32xbf16, #tpu.memory_space<vmem>>, %arg8: memref<1x4x32x128xbf16, #tpu.memory_space<vmem>>, %arg9: memref<1x4x128x32xbf16, #tpu.memory_space<vmem>>) attributes {dimension_semantics = [#tpu.dimension_semantics<parallel>, #tpu.dimension_semantics<parallel>], iteration_bounds = array<i64: 2, 2>, scalar_prefetch = 0 : i64, scratch_operands = 0 : i64, tpu.core_type = #tpu.core_type<tc>, window_params = [{transform_indices = @transform_0, window_bounds = array<i64: 1, 128, 128>}, {pipeline_mode = #tpu.pipeline_mode<synchronous>, transform_indices = @transform_1, window_bounds = array<i64: 1, 128>}, {pipeline_mode = #tpu.pipeline_mode<synchronous>, transform_indices = @transform_2, window_bounds = array<i64: 1, 128>}, {pipeline_mode = #tpu.pipeline_mode<synchronous>, transform_indices = @transform_3, window_bounds = array<i64: 128, 384>}, {pipeline_mode = #tpu.pipeline_mode<synchronous>, transform_indices = @transform_4, window_bounds = array<i64: 1, 384>}, {transform_indices = @transform_5, window_bounds = array<i64: 1, 4, 128, 32>}, {transform_indices = @transform_6, window_bounds = array<i64: 1, 4, 32, 128>}, {transform_indices = @transform_7, window_bounds = array<i64: 1, 4, 128, 32>}]} {
    %c0 = arith.constant 0 : index
    %c0_0 = arith.constant 0 : index
    %c0_1 = arith.constant 0 : index
    %0 = vector.load %arg2[%c0, %c0_0, %c0_1] : memref<1x128x128xf32, #tpu.memory_space<vmem>>, vector<1x128x128xf32>
    %1 = vector.shape_cast %0 : vector<1x128x128xf32> to vector<128x128xf32>
    %c0_2 = arith.constant 0 : index
    %c0_3 = arith.constant 0 : index
    %2 = vector.load %arg3[%c0_2, %c0_3] : memref<1x128xf32, #tpu.memory_space<vmem>>, vector<1x128xf32>
    %c0_4 = arith.constant 0 : index
    %c0_5 = arith.constant 0 : index
    %3 = vector.load %arg4[%c0_4, %c0_5] : memref<1x128xf32, #tpu.memory_space<vmem>>, vector<1x128xf32>
    %cst = arith.constant dense<0.000000e+00> : vector<128xf32>
    %4 = vector.multi_reduction <add>, %1, %cst [1] : vector<128x128xf32> to vector<128xf32>
    %5 = vector.shape_cast %4 : vector<128xf32> to vector<128x1xf32>
    %cst_6 = arith.constant 1.280000e+02 : f32
    %6 = vector.broadcast %cst_6 : f32 to vector<128x1xf32>
    %7 = arith.divf %5, %6 : vector<128x1xf32>
    %8 = vector.broadcast %7 : vector<128x1xf32> to vector<128x128xf32>
    %9 = arith.subf %1, %8 : vector<128x128xf32>
    %10 = arith.mulf %9, %9 : vector<128x128xf32>
    %cst_7 = arith.constant dense<0.000000e+00> : vector<128xf32>
    %11 = vector.multi_reduction <add>, %10, %cst_7 [1] : vector<128x128xf32> to vector<128xf32>
    %12 = vector.shape_cast %11 : vector<128xf32> to vector<128x1xf32>
    %cst_8 = arith.constant 1.280000e+02 : f32
    %13 = vector.broadcast %cst_8 : f32 to vector<128x1xf32>
    %14 = arith.divf %12, %13 : vector<128x1xf32>
    %15 = vector.broadcast %7 : vector<128x1xf32> to vector<128x128xf32>
    %16 = arith.subf %1, %15 : vector<128x128xf32>
    %cst_9 = arith.constant 9.99999974E-6 : f32
    %17 = vector.broadcast %cst_9 : f32 to vector<128x1xf32>
    %18 = arith.addf %14, %17 : vector<128x1xf32>
    %19 = math.rsqrt %18 : vector<128x1xf32>
    %20 = vector.broadcast %19 : vector<128x1xf32> to vector<128x128xf32>
    %21 = arith.mulf %16, %20 : vector<128x128xf32>
    %22 = vector.broadcast %2 : vector<1x128xf32> to vector<128x128xf32>
    %23 = arith.mulf %21, %22 : vector<128x128xf32>
    %24 = vector.broadcast %3 : vector<1x128xf32> to vector<128x128xf32>
    %25 = arith.addf %23, %24 : vector<128x128xf32>
    %26 = arith.truncf %25 : vector<128x128xf32> to vector<128x128xbf16>
    %c0_10 = arith.constant 0 : index
    %c0_11 = arith.constant 0 : index
    %27 = vector.load %arg5[%c0_10, %c0_11] : memref<128x384xbf16, #tpu.memory_space<vmem>>, vector<128x384xbf16>
    %cst_12 = arith.constant dense<0.000000e+00> : vector<128x384xf32>
    %28 = tpu.matmul %26, %27, %cst_12 {dimension_numbers = #tpu.dot_dimension_numbers<[1], [0], [0], [1], [0, 0, 1, 1], [], []>} : vector<128x128xbf16>, vector<128x384xbf16>, vector<128x384xf32> -> vector<128x384xf32>
    %c0_13 = arith.constant 0 : index
    %c0_14 = arith.constant 0 : index
    %29 = vector.load %arg6[%c0_13, %c0_14] : memref<1x384xf32, #tpu.memory_space<vmem>>, vector<1x384xf32>
    %30 = vector.broadcast %29 : vector<1x384xf32> to vector<128x384xf32>
    %31 = arith.addf %28, %30 : vector<128x384xf32>
    %32 = vector.extract_strided_slice %31 {offsets = [0, 0], sizes = [128, 128], strides = [1, 1]} : vector<128x384xf32> to vector<128x128xf32>
    %cst_15 = arith.constant 0.176776692 : f32
    %33 = vector.broadcast %cst_15 : f32 to vector<128x128xf32>
    %34 = arith.mulf %32, %33 : vector<128x128xf32>
    %35 = vector.extract_strided_slice %31 {offsets = [0, 128], sizes = [128, 128], strides = [1, 1]} : vector<128x384xf32> to vector<128x128xf32>
    %36 = vector.extract_strided_slice %31 {offsets = [0, 256], sizes = [128, 128], strides = [1, 1]} : vector<128x384xf32> to vector<128x128xf32>
    %37 = vector.extract_strided_slice %34 {offsets = [0, 0], sizes = [128, 32], strides = [1, 1]} : vector<128x128xf32> to vector<128x32xf32>
    %38 = arith.truncf %37 : vector<128x32xf32> to vector<128x32xbf16>
    %c0_16 = arith.constant 0 : index
    %c0_17 = arith.constant 0 : index
    %c0_18 = arith.constant 0 : index
    %c0_19 = arith.constant 0 : index
    %39 = vector.load %arg7[%c0_16, %c0_17, %c0_18, %c0_19] : memref<1x4x128x32xbf16, #tpu.memory_space<vmem>>, vector<1x1x128x32xbf16>
    %40 = vector.shape_cast %39 : vector<1x1x128x32xbf16> to vector<128x32xbf16>
    %41 = vector.shape_cast %38 : vector<128x32xbf16> to vector<1x1x128x32xbf16>
    tpu.vector_store %arg7[%c0_16, %c0_17, %c0_18, %c0_19], %41 {strides = array<i32>} : memref<1x4x128x32xbf16, #tpu.memory_space<vmem>>, vector<1x1x128x32xbf16>,
    %42 = vector.extract_strided_slice %35 {offsets = [0, 0], sizes = [128, 32], strides = [1, 1]} : vector<128x128xf32> to vector<128x32xf32>
    %43 = tpu.transpose %42, [1, 0] : vector<128x32xf32> -> vector<32x128xf32>
    %44 = arith.truncf %43 : vector<32x128xf32> to vector<32x128xbf16>
    %c0_20 = arith.constant 0 : index
    %c0_21 = arith.constant 0 : index
    %c0_22 = arith.constant 0 : index
    %c0_23 = arith.constant 0 : index
    %45 = vector.load %arg8[%c0_20, %c0_21, %c0_22, %c0_23] : memref<1x4x32x128xbf16, #tpu.memory_space<vmem>>, vector<1x1x32x128xbf16>
    %46 = vector.shape_cast %45 : vector<1x1x32x128xbf16> to vector<32x128xbf16>
    %47 = vector.shape_cast %44 : vector<32x128xbf16> to vector<1x1x32x128xbf16>
    tpu.vector_store %arg8[%c0_20, %c0_21, %c0_22, %c0_23], %47 {strides = array<i32>} : memref<1x4x32x128xbf16, #tpu.memory_space<vmem>>, vector<1x1x32x128xbf16>,
    %48 = vector.extract_strided_slice %36 {offsets = [0, 0], sizes = [128, 32], strides = [1, 1]} : vector<128x128xf32> to vector<128x32xf32>
    %49 = arith.truncf %48 : vector<128x32xf32> to vector<128x32xbf16>
    %c0_24 = arith.constant 0 : index
    %c0_25 = arith.constant 0 : index
    %c0_26 = arith.constant 0 : index
    %c0_27 = arith.constant 0 : index
    %50 = vector.load %arg9[%c0_24, %c0_25, %c0_26, %c0_27] : memref<1x4x128x32xbf16, #tpu.memory_space<vmem>>, vector<1x1x128x32xbf16>
    %51 = vector.shape_cast %50 : vector<1x1x128x32xbf16> to vector<128x32xbf16>
    %52 = vector.shape_cast %49 : vector<128x32xbf16> to vector<1x1x128x32xbf16>
    tpu.vector_store %arg9[%c0_24, %c0_25, %c0_26, %c0_27], %52 {strides = array<i32>} : memref<1x4x128x32xbf16, #tpu.memory_space<vmem>>, vector<1x1x128x32xbf16>,
    %53 = vector.extract_strided_slice %34 {offsets = [0, 32], sizes = [128, 32], strides = [1, 1]} : vector<128x128xf32> to vector<128x32xf32>
    %54 = arith.truncf %53 : vector<128x32xf32> to vector<128x32xbf16>
    %c0_28 = arith.constant 0 : index
    %c1 = arith.constant 1 : index
    %c0_29 = arith.constant 0 : index
    %c0_30 = arith.constant 0 : index
    %55 = vector.load %arg7[%c0_28, %c1, %c0_29, %c0_30] : memref<1x4x128x32xbf16, #tpu.memory_space<vmem>>, vector<1x1x128x32xbf16>
    %56 = vector.shape_cast %55 : vector<1x1x128x32xbf16> to vector<128x32xbf16>
    %57 = vector.shape_cast %54 : vector<128x32xbf16> to vector<1x1x128x32xbf16>
    tpu.vector_store %arg7[%c0_28, %c1, %c0_29, %c0_30], %57 {strides = array<i32>} : memref<1x4x128x32xbf16, #tpu.memory_space<vmem>>, vector<1x1x128x32xbf16>,
    %58 = vector.extract_strided_slice %35 {offsets = [0, 32], sizes = [128, 32], strides = [1, 1]} : vector<128x128xf32> to vector<128x32xf32>
    %59 = tpu.transpose %58, [1, 0] : vector<128x32xf32> -> vector<32x128xf32>
    %60 = arith.truncf %59 : vector<32x128xf32> to vector<32x128xbf16>
    %c0_31 = arith.constant 0 : index
    %c1_32 = arith.constant 1 : index
    %c0_33 = arith.constant 0 : index
    %c0_34 = arith.constant 0 : index
    %61 = vector.load %arg8[%c0_31, %c1_32, %c0_33, %c0_34] : memref<1x4x32x128xbf16, #tpu.memory_space<vmem>>, vector<1x1x32x128xbf16>
    %62 = vector.shape_cast %61 : vector<1x1x32x128xbf16> to vector<32x128xbf16>
    %63 = vector.shape_cast %60 : vector<32x128xbf16> to vector<1x1x32x128xbf16>
    tpu.vector_store %arg8[%c0_31, %c1_32, %c0_33, %c0_34], %63 {strides = array<i32>} : memref<1x4x32x128xbf16, #tpu.memory_space<vmem>>, vector<1x1x32x128xbf16>,
    %64 = vector.extract_strided_slice %36 {offsets = [0, 32], sizes = [128, 32], strides = [1, 1]} : vector<128x128xf32> to vector<128x32xf32>
    %65 = arith.truncf %64 : vector<128x32xf32> to vector<128x32xbf16>
    %c0_35 = arith.constant 0 : index
    %c1_36 = arith.constant 1 : index
    %c0_37 = arith.constant 0 : index
    %c0_38 = arith.constant 0 : index
    %66 = vector.load %arg9[%c0_35, %c1_36, %c0_37, %c0_38] : memref<1x4x128x32xbf16, #tpu.memory_space<vmem>>, vector<1x1x128x32xbf16>
    %67 = vector.shape_cast %66 : vector<1x1x128x32xbf16> to vector<128x32xbf16>
    %68 = vector.shape_cast %65 : vector<128x32xbf16> to vector<1x1x128x32xbf16>
    tpu.vector_store %arg9[%c0_35, %c1_36, %c0_37, %c0_38], %68 {strides = array<i32>} : memref<1x4x128x32xbf16, #tpu.memory_space<vmem>>, vector<1x1x128x32xbf16>,
    %69 = vector.extract_strided_slice %34 {offsets = [0, 64], sizes = [128, 32], strides = [1, 1]} : vector<128x128xf32> to vector<128x32xf32>
    %70 = arith.truncf %69 : vector<128x32xf32> to vector<128x32xbf16>
    %c0_39 = arith.constant 0 : index
    %c2 = arith.constant 2 : index
    %c0_40 = arith.constant 0 : index
    %c0_41 = arith.constant 0 : index
    %71 = vector.load %arg7[%c0_39, %c2, %c0_40, %c0_41] : memref<1x4x128x32xbf16, #tpu.memory_space<vmem>>, vector<1x1x128x32xbf16>
    %72 = vector.shape_cast %71 : vector<1x1x128x32xbf16> to vector<128x32xbf16>
    %73 = vector.shape_cast %70 : vector<128x32xbf16> to vector<1x1x128x32xbf16>
    tpu.vector_store %arg7[%c0_39, %c2, %c0_40, %c0_41], %73 {strides = array<i32>} : memref<1x4x128x32xbf16, #tpu.memory_space<vmem>>, vector<1x1x128x32xbf16>,
    %74 = vector.extract_strided_slice %35 {offsets = [0, 64], sizes = [128, 32], strides = [1, 1]} : vector<128x128xf32> to vector<128x32xf32>
    %75 = tpu.transpose %74, [1, 0] : vector<128x32xf32> -> vector<32x128xf32>
    %76 = arith.truncf %75 : vector<32x128xf32> to vector<32x128xbf16>
    %c0_42 = arith.constant 0 : index
    %c2_43 = arith.constant 2 : index
    %c0_44 = arith.constant 0 : index
    %c0_45 = arith.constant 0 : index
    %77 = vector.load %arg8[%c0_42, %c2_43, %c0_44, %c0_45] : memref<1x4x32x128xbf16, #tpu.memory_space<vmem>>, vector<1x1x32x128xbf16>
    %78 = vector.shape_cast %77 : vector<1x1x32x128xbf16> to vector<32x128xbf16>
    %79 = vector.shape_cast %76 : vector<32x128xbf16> to vector<1x1x32x128xbf16>
    tpu.vector_store %arg8[%c0_42, %c2_43, %c0_44, %c0_45], %79 {strides = array<i32>} : memref<1x4x32x128xbf16, #tpu.memory_space<vmem>>, vector<1x1x32x128xbf16>,
    %80 = vector.extract_strided_slice %36 {offsets = [0, 64], sizes = [128, 32], strides = [1, 1]} : vector<128x128xf32> to vector<128x32xf32>
    %81 = arith.truncf %80 : vector<128x32xf32> to vector<128x32xbf16>
    %c0_46 = arith.constant 0 : index
    %c2_47 = arith.constant 2 : index
    %c0_48 = arith.constant 0 : index
    %c0_49 = arith.constant 0 : index
    %82 = vector.load %arg9[%c0_46, %c2_47, %c0_48, %c0_49] : memref<1x4x128x32xbf16, #tpu.memory_space<vmem>>, vector<1x1x128x32xbf16>
    %83 = vector.shape_cast %82 : vector<1x1x128x32xbf16> to vector<128x32xbf16>
    %84 = vector.shape_cast %81 : vector<128x32xbf16> to vector<1x1x128x32xbf16>
    tpu.vector_store %arg9[%c0_46, %c2_47, %c0_48, %c0_49], %84 {strides = array<i32>} : memref<1x4x128x32xbf16, #tpu.memory_space<vmem>>, vector<1x1x128x32xbf16>,
    %85 = vector.extract_strided_slice %34 {offsets = [0, 96], sizes = [128, 32], strides = [1, 1]} : vector<128x128xf32> to vector<128x32xf32>
    %86 = arith.truncf %85 : vector<128x32xf32> to vector<128x32xbf16>
    %c0_50 = arith.constant 0 : index
    %c3 = arith.constant 3 : index
    %c0_51 = arith.constant 0 : index
    %c0_52 = arith.constant 0 : index
    %87 = vector.load %arg7[%c0_50, %c3, %c0_51, %c0_52] : memref<1x4x128x32xbf16, #tpu.memory_space<vmem>>, vector<1x1x128x32xbf16>
    %88 = vector.shape_cast %87 : vector<1x1x128x32xbf16> to vector<128x32xbf16>
    %89 = vector.shape_cast %86 : vector<128x32xbf16> to vector<1x1x128x32xbf16>
    tpu.vector_store %arg7[%c0_50, %c3, %c0_51, %c0_52], %89 {strides = array<i32>} : memref<1x4x128x32xbf16, #tpu.memory_space<vmem>>, vector<1x1x128x32xbf16>,
    %90 = vector.extract_strided_slice %35 {offsets = [0, 96], sizes = [128, 32], strides = [1, 1]} : vector<128x128xf32> to vector<128x32xf32>
    %91 = tpu.transpose %90, [1, 0] : vector<128x32xf32> -> vector<32x128xf32>
    %92 = arith.truncf %91 : vector<32x128xf32> to vector<32x128xbf16>
    %c0_53 = arith.constant 0 : index
    %c3_54 = arith.constant 3 : index
    %c0_55 = arith.constant 0 : index
    %c0_56 = arith.constant 0 : index
    %93 = vector.load %arg8[%c0_53, %c3_54, %c0_55, %c0_56] : memref<1x4x32x128xbf16, #tpu.memory_space<vmem>>, vector<1x1x32x128xbf16>
    %94 = vector.shape_cast %93 : vector<1x1x32x128xbf16> to vector<32x128xbf16>
    %95 = vector.shape_cast %92 : vector<32x128xbf16> to vector<1x1x32x128xbf16>
    tpu.vector_store %arg8[%c0_53, %c3_54, %c0_55, %c0_56], %95 {strides = array<i32>} : memref<1x4x32x128xbf16, #tpu.memory_space<vmem>>, vector<1x1x32x128xbf16>,
    %96 = vector.extract_strided_slice %36 {offsets = [0, 96], sizes = [128, 32], strides = [1, 1]} : vector<128x128xf32> to vector<128x32xf32>
    %97 = arith.truncf %96 : vector<128x32xf32> to vector<128x32xbf16>
    %c0_57 = arith.constant 0 : index
    %c3_58 = arith.constant 3 : index
    %c0_59 = arith.constant 0 : index
    %c0_60 = arith.constant 0 : index
    %98 = vector.load %arg9[%c0_57, %c3_58, %c0_59, %c0_60] : memref<1x4x128x32xbf16, #tpu.memory_space<vmem>>, vector<1x1x128x32xbf16>
    %99 = vector.shape_cast %98 : vector<1x1x128x32xbf16> to vector<128x32xbf16>
    %100 = vector.shape_cast %97 : vector<128x32xbf16> to vector<1x1x128x32xbf16>
    tpu.vector_store %arg9[%c0_57, %c3_58, %c0_59, %c0_60], %100 {strides = array<i32>} : memref<1x4x128x32xbf16, #tpu.memory_space<vmem>>, vector<1x1x128x32xbf16>,
    return
  }
  func.func @transform_0(%arg0: i32, %arg1: i32) -> (i32, i32, i32) {
    %c0_i32 = arith.constant 0 : i32
    %c0_i32_0 = arith.constant 0 : i32
    return %arg0, %arg1, %c0_i32 : i32, i32, i32
  }
  func.func @transform_1(%arg0: i32, %arg1: i32) -> (i32, i32) {
    %c0_i32 = arith.constant 0 : i32
    %c0_i32_0 = arith.constant 0 : i32
    %c0_i32_1 = arith.constant 0 : i32
    return %c0_i32, %c0_i32_0 : i32, i32
  }
  func.func @transform_2(%arg0: i32, %arg1: i32) -> (i32, i32) {
    %c0_i32 = arith.constant 0 : i32
    %c0_i32_0 = arith.constant 0 : i32
    %c0_i32_1 = arith.constant 0 : i32
    return %c0_i32, %c0_i32_0 : i32, i32
  }
  func.func @transform_3(%arg0: i32, %arg1: i32) -> (i32, i32) {
    %c0_i32 = arith.constant 0 : i32
    %c0_i32_0 = arith.constant 0 : i32
    %c0_i32_1 = arith.constant 0 : i32
    return %c0_i32, %c0_i32_0 : i32, i32
  }
  func.func @transform_4(%arg0: i32, %arg1: i32) -> (i32, i32) {
    %c0_i32 = arith.constant 0 : i32
    %c0_i32_0 = arith.constant 0 : i32
    %c0_i32_1 = arith.constant 0 : i32
    return %c0_i32, %c0_i32_0 : i32, i32
  }
  func.func @transform_5(%arg0: i32, %arg1: i32) -> (i32, i32, i32, i32) {
    %c0_i32 = arith.constant 0 : i32
    %c0_i32_0 = arith.constant 0 : i32
    %c0_i32_1 = arith.constant 0 : i32
    return %arg0, %c0_i32, %arg1, %c0_i32_0 : i32, i32, i32, i32
  }
  func.func @transform_6(%arg0: i32, %arg1: i32) -> (i32, i32, i32, i32) {
    %c0_i32 = arith.constant 0 : i32
    %c0_i32_0 = arith.constant 0 : i32
    %c0_i32_1 = arith.constant 0 : i32
    return %arg0, %c0_i32, %c0_i32_0, %arg1 : i32, i32, i32, i32
  }
  func.func @transform_7(%arg0: i32, %arg1: i32) -> (i32, i32, i32, i32) {
    %c0_i32 = arith.constant 0 : i32
    %c0_i32_0 = arith.constant 0 : i32
    %c0_i32_1 = arith.constant 0 : i32
    return %arg0, %c0_i32, %arg1, %c0_i32_0 : i32, i32, i32, i32
  }
}

</mosaic_0001>

<bundles_post_ra>
// kernel: tpu_custom_call.1
= control target key start
LH: loop header
LB: loop body
LE: loop exit
PB: predicated region body
PF: predicated region fallthrough
CT: control target
= control target key end

     0   :  { %s4950_s0 = inlined_call_operand.hbm [shape: f32[2,256,128], index: 0, kind: input, shape index: {}]   ;;  %s4951_s1 = inlined_call_operand.vmem [shape: f32[1,128], index: 1, kind: input, shape index: {}]   ;;  %s4952_s2 = inlined_call_operand.vmem [shape: f32[1,128], index: 2, kind: input, shape index: {}]   ;;  %s4953_s3 = inlined_call_operand.hbm [shape: bf16[128,384], index: 3, kind: input, shape index: {}]   ;;  %s4954_s4 = inlined_call_operand.vmem [shape: f32[1,384], index: 4, kind: input, shape index: {}]   ;;  %s4955_s5 = inlined_call_operand.vmem [shape: bf16[2,4,256,32], index: 5, kind: output, shape index: {0}]   ;;  %s4956_s6 = inlined_call_operand.hbm [shape: bf16[2,4,32,256], index: 6, kind: output, shape index: {1}]   ;;  %s4957_s7 = inlined_call_operand.vmem [shape: bf16[2,4,256,32], index: 7, kind: output, shape index: {2}]  }
   0x1   :  { %4968 = sst [smem:[#allocation18_spill]] %s4953_s3 }
   0x2   :  { %4969 = sst [smem:[#allocation19_spill]] %s4955_s5 }
   0x3   :  { %4970 = sst [smem:[#allocation20_spill]] %s4956_s6 }
   0x4   :  { %4971 = sst [smem:[#allocation21_spill]] %s4957_s7 }
   0x5   :  { %13 = vsyncpa [#allocation3], 0 }
   0x6   :  { %15 = vsyncpa [#allocation3 + $0x1], 0 }
   0x7   :  { %16 = vsyncpa [#allocation6], 0 }
   0x8   :  { %17 = vsyncpa [#allocation4], 0 }
   0x9   :  { %19 = vsyncpa [#allocation4 + $0x1], 0  ;;  %s3556_s24 = smov 0   ;;  %s3558_s25 = smov 0  }
   0xa   :  { %s3560_s26 = smov 0   ;;  %s3562_s27 = smov 0  }
   0xb   :  { %s3564_s28 = smov 0   ;;  %s3566_s29 = smov 0  }
   0xc   :  { %s3568_s30 = smov 0   ;;  %s3570_s8 = smov 0  }
   0xd LB: > { %4972 = sst [smem:[#allocation13_spill]] %s3473_s24  ;;  %s2705_s9 = sadd.s32 4294967295, %s3501_s8   ;;  %s3501_s8 = sphi %s3570_s8, %s25_s8   ;;  %s3497_s30 = sphi %s3568_s30, %s5006_s30   ;;  %s3493_s29 = sphi %s3566_s29, %s5000_s29   ;;  %s3489_s28 = sphi %s3564_s28, %s5005_s28   ;;  %s3485_s27 = sphi %s3562_s27, %s4999_s27   ;;  %s3481_s26 = sphi %s3560_s26, %s5004_s26   ;;  %s3477_s25 = sphi %s3558_s25, %s5003_s25   ;;  %s3473_s24 = sphi %s3556_s24, %s5002_s24  }
   0xe   : > { %4973 = sst [smem:[#allocation14_spill]] %s3493_s29  ;;  %s2706_s10 = sadd.s32 4294967294, %s3501_s8  }
   0xf   : > { %p59_p0 = scmp.ne.s32.totalorder %s3477_s25, %s3473_s24  ;;  %p3600_p1 = scmp.eq.s32.totalorder %s2705_s9, 0 }
  0x10   : > { %p3604_p2 = scmp.eq.s32.totalorder %s2705_s9, 3  ;;  %p203_p3 = scmp.eq.s32.totalorder %s2706_s10, 3 }
  0x11   : > { %s4974_s11 = scalar_select %p3600_p1, 1, 0 }
  0x12   : > { %s4975_s12 = scalar_select %p3604_p2, 1, 0 }
  0x13   : > { %p3610_p4 = por %p3600_p1, %p59_p0  ;;  %p2707_p5 = scmp.ge.s32.totalorder %s3501_s8, 1 }
  0x14   : > { %p3615_p6 = por %p203_p3, %p59_p0  ;;  %p238_p7 = scmp.lt.s32.totalorder %s3501_s8, 5 }
  0x15   : > { %s4976_s13 = scalar_select %p3610_p4, 1, 0 }
  0x16   : > { %s4977_s14 = scalar_select %p3615_p6, 1, 0 }
  0x17   : > { %p3620_p8 = pnand %p2707_p5, %p238_p7  ;;  %s3503_s16 = smov [#allocation5]  }
  0x18   : > { %4978 = sst [smem:[#allocation15_spill]] %s4977_s14  ;;  %s256_s17 = sshll.u32 %s3503_s16, 4  ;;  %s257_s17 = int_to_ptr.vmem [resolvable:$true] %s256_s17 }
  0x19   : > { %s4979_s15 = scalar_select %p3620_p8, 1, 0 }
  0x1a   : > { %p3066_p9 = pneg %p3620_p8  ;;  %s4981_s3 = sld [smem:[#allocation18_spill]] }
  0x1c   : > { %p3628_p10 = pnand %p3066_p9, %p3600_p1 }
  0x1e   : > { %p3343_p12 = pneg %p3628_p10 }
  0x20   : > { %s3341_s21 = scalar_lea.hbm %s4981_s3, 3072 }
  0x21   : > { %p3342_p11 = scmp.ne.s32.totalorder %s4981_s3, %s3341_s21  ;;  %p3348_p3 = scmp.lt.u32.totalorder %s3341_s21, %s4981_s3 }
  0x23   : > { %p3344_p13 = pnand %p3343_p12, %p3342_p11 }
  0x25   : > { %p3345_p0 = pneg %p3344_p13 }
  0x27   : > { %p3350_p5 = pnand %p3348_p3, %p3345_p0 }
  0x29   : > { %3353 = shalt.err (!%p3350_p5)
}
  0x2a   : > { %s3354_s16 = scalar_lea.vmem %s257_s17, 3072  ;;  %p3362_p1 = scmp.lt.s32.totalorder %s257_s17, %s257_s17 }
  0x2b   : > { %p3355_p7 = scmp.ne.s32.totalorder %s257_s17, %s3354_s16  ;;  %p3363_p4 = scmp.lt.s32.totalorder %s3354_s16, %s3354_s16 }
  0x2d   : > { %p3357_p9 = pnand %p3355_p7, %p3343_p12  ;;  %p3364_p8 = por %p3363_p4, %p3362_p1 }
  0x2f   : > { %p3358_p6 = pneg %p3357_p9 }
  0x31   : > { %p3365_p2 = pnand %p3364_p8, %p3358_p6 }
  0x33   : > { %3368 = shalt.err (!%p3365_p2)
}
  0x34   : > { %s3504_s19 = smov 192   ;;  %s3505_s20 = smov 12  }
  0x35   : > { %3069 = dma.hbm_to_vmem [thread:$0]  (!%p3628_p10), %s4981_s3, 3072, %s257_s17, [#allocation6], %s3504_s19, %s3504_s19, %s3505_s20  }
  0x36   : > { %s34_s23 = sadd.s32 1, %s3493_s29  ;;  %s37_s9 = sadd.s32 1, %s3497_s30 }
  0x37   : > { %p35_p1 = scmp.ge.s32.totalorder %s34_s23, 2  ;;  %s46_s10 = sadd.s32 1, %s3481_s26 }
  0x38   : > { %p53_p2 = scmp.ne.s32.totalorder %s3481_s26, %s3477_s25  ;;  %p54_p4 = scmp.eq.s32.totalorder %s3501_s8, 0 }
  0x39   : > { %s5008_s23 = smov (%p35_p1, %s34_s23), 0  ;;  %s5010_s9 = smov (!%p35_p1, %s37_s9), %s3497_s30 }
  0x3a   : > { %4982 = sst [smem:[#allocation16_spill]] %s5008_s23  ;;  %s42_s16 = ssub.s32 %s3493_s29, %s5008_s23 }
  0x3b   : > { %p39_p6 = scmp.ge.s32.totalorder %s5010_s9, 2  ;;  %p4983_p8 = scmp.ne.s32.totalorder %s4975_s12, 0 }
  0x3c   : > { %p3665_p10 = por %p54_p4, %p53_p2  ;;  %p3079_p12 = scmp.lt.s32.totalorder %s3501_s8, 4 }
  0x3d   : > { %p3661_p11 = por %p4983_p8, %p53_p2  ;;  %s5012_s9 = smov (%p39_p6, %s5010_s9), 0 }
  0x3e   : > { %4986 = sst [smem:[#allocation17_spill]] %s5012_s9  ;;  %s273_s19 = sand.u32 1, %s3481_s26  }
  0x3f   : > { %s2711_s20 = sshll.u32 %s3493_s29, 4  ;;  %s41_s21 = ssub.s32 %s3497_s30, %s5012_s9 }
  0x40   : > { %s43_s22 = sor.u32 %s42_s16, %s41_s21  ;;  %s2710_s3 = sshll.u32 %s273_s19, 7 }
  0x41   : > { %p44_p13 = scmp.eq.s32.totalorder %s43_s22, 0  ;;  %s2712_s12 = sshll.u32 %s3497_s30, 5 }
  0x42   : > { %s277_s23 = scalar_lea.vmem [#allocation2], %s2710_s3  ;;  %s283_s7 = sadd.s32 %s2712_s12, %s2711_s20 }
  0x43   : > { %s286_s14 = sshll.u32 %s277_s23, 4  ;;  %s2713_s6 = sshll.u32 %s283_s7, 7  ;;  %s3680_s14 = int_to_ptr.vmem [resolvable:$true] %s286_s14 }
  0x44   : > { %s3678_s24 = scalar_select %p44_p13, %s3481_s26, %s46_s10  }
  0x45   : > { %p3686_p0 = pnand %p3079_p12, %p3665_p10  ;;  %s3693_s16 = scalar_lea.hbm %s4950_s0, %s2713_s6 }
  0x46   : > { %s3695_s3 = scalar_lea.sflag [#allocation3], %s273_s19  ;;  %s3369_s7 = scalar_lea.hbm %s3693_s16, 2048 }
  0x47   : > { %p3370_p3 = scmp.ne.s32.totalorder %s3693_s16, %s3369_s7  ;;  %p3371_p5 = pneg %p3686_p0 }
  0x48   : > { %s3374_s9 = scalar_lea.hbm %s4950_s0, 8192  ;;  %p3375_p1 = scmp.lt.u32.totalorder %s3693_s16, %s4950_s0 }
  0x49   : > { %p3372_p7 = pnand %p3371_p5, %p3370_p3  ;;  %p3376_p2 = scmp.lt.u32.totalorder %s3374_s9, %s3369_s7 }
  0x4a   : > { %p3378_p6 = scmp.lt.u32.totalorder %s3369_s7, %s3693_s16 }
  0x4b   : > { %p3373_p9 = pneg %p3372_p7  ;;  %p3377_p4 = por %p3376_p2, %p3375_p1 }
  0x4d   : > { %p3379_p8 = por %p3378_p6, %p3377_p4 }
  0x4f   : > { %p3380_p10 = pnand %p3379_p8, %p3373_p9 }
  0x51   : > { %3383 = shalt.err (!%p3380_p10)
}
  0x52   : > { %s3384_s17 = scalar_lea.vmem %s3680_s14, 2048  ;;  %s3506_s19 = smov [#allocation2]  }
  0x53   : > { %p3385_p12 = scmp.ne.s32.totalorder %s3680_s14, %s3384_s17  ;;  %s3389_s20 = sshll.u32 %s3506_s19, 4  ;;  %s3390_s20 = int_to_ptr.vmem [resolvable:$false] %s3389_s20 }
  0x54   : > { %s3391_s21 = scalar_lea.vmem %s3390_s20, 4096  ;;  %p3392_p7 = scmp.lt.s32.totalorder %s3680_s14, %s3390_s20 }
  0x55   : > { %p3387_p13 = pnand %p3385_p12, %p3371_p5  ;;  %p3393_p1 = scmp.lt.s32.totalorder %s3391_s21, %s3384_s17 }
  0x57   : > { %p3388_p3 = pneg %p3387_p13  ;;  %p3394_p2 = por %p3393_p1, %p3392_p7 }
  0x59   : > { %p3395_p4 = pnand %p3394_p2, %p3388_p3 }
  0x5b   : > { %3398 = shalt.err (!%p3395_p4)
}
  0x5c   : > { %s3507_s22 = smov 128   ;;  %s3508_s12 = smov 8  }
  0x5d   : > { %3073 = dma.hbm_to_vmem [thread:$0]  (!%p3686_p0), %s3693_s16, 2048, %s3680_s14, %s3695_s3, %s3507_s22, %s3507_s22, %s3508_s12  }
  0x5e   : > { %p4988_p5 = scmp.ne.s32.totalorder %s4979_s15, 0 }
  0x5f   : > { %s3726_s7 = sand.u32 (!%p4988_p5), 1, %s3477_s25   ;;  %p4989_p9 = scmp.ne.s32.totalorder (!%p4988_p5), %s4976_s13, 0 }
  0x60   : > { %298 = sbr.rel (%p4988_p5) target bundleno = 1340 (0x53c), region = 40  ;;  %s2715_s23 = sshll.u32 (!%p4988_p5), %s3726_s7, 7 }
  0x61   : > { %s301_s29 = scalar_lea.sflag (!%p4988_p5), [#allocation3], %s3726_s7  ;;  %s3730_s9 = scalar_lea.vmem (!%p4988_p5), [#allocation2], %s2715_s23 }
  0x67   : > { %3460 = dma.done.wait (%p4989_p9), %s301_s29, 2048  }
  0x68   : > { %3462 = vsyncadd (%p4989_p9), %s301_s29, 4294965248  ;;  %p4990_p0 = scmp.ne.s32.totalorder %s4974_s11, 0 }
  0x6a   : > { %3464 = dma.done.wait (%p4990_p0), [#allocation6], 3072  }
  0x6b   : > { %3466 = vsyncadd (%p4990_p0), [#allocation6], 4294964224  ;;  %v351_v0 = vld [vmem:[%s3730_s9] sm:$0xff]  ;;  %v353_v1 = vld [vmem:[%s3730_s9 + $0x10] sm:$0xff]  ;;  %s2717_s3 = sshll.u32 %s3726_s7, 8  ;;  %vm1065_vm0 = vcmask 257024  }
  0x6c   : > { %369 = vadd.xlane.f32.xlu0 %v351_v0  ;;  %373 = vadd.xlane.f32.xlu1 %v353_v1  ;;  %v352_v2 = vld [vmem:[%s3730_s9 + $0x8] sm:$0xff]  ;;  %v354_v3 = vld [vmem:[%s3730_s9 + $0x18] sm:$0xff]  ;;  %v355_v4 = vld [vmem:[%s3730_s9 + $0x20] sm:$0xff]  ;;  %s3948_s6 = scalar_lea.vmem [#allocation7], %s2717_s3  ;;  %s3510_s10 = smov 96  }
  0x6d   : > { %v356_v5 = vld [vmem:[%s3730_s9 + $0x28] sm:$0xff]  ;;  %v3747_v6 = vld [vmem:[%s3730_s9 + $0x30] sm:$0xff]  ;;  %v358_v7 = vld [vmem:[%s3730_s9 + $0x38] sm:$0xff]  ;;  %s3965_s17 = scalar_lea.vmem [#allocation9], %s2717_s3  ;;  %s3511_s19 = smov 64  }
  0x6e   : > { %v3751_v8 = vld [vmem:[%s3730_s9 + $0x40] sm:$0xff]  ;;  %v3754_v9 = vld [vmem:[%s3730_s9 + $0x48] sm:$0xff]  ;;  %v3760_v10 = vld [vmem:[%s3730_s9 + $0x50] sm:$0xff]  ;;  %s3512_s20 = smov 32   ;;  %s2718_s21 = sshll.u32 %s3726_s7, 6 }
  0x6f   : > { %v3763_v11 = vld [vmem:[%s3730_s9 + $0x58] sm:$0xff]  ;;  %v3768_v12 = vld [vmem:[%s3730_s9 + $0x60] sm:$0xff]  ;;  %v3771_v13 = vld [vmem:[%s3730_s9 + $0x68] sm:$0xff]  ;;  %s4708_s22 = scalar_lea.vmem [#allocation8], %s2718_s21  ;;  %s1928_s12 = scalar_lea.sflag [#allocation4], %s3726_s7 }
  0x70   : > { %371 = vadd.xlane.f32.xlu0 %v352_v2  ;;  %375 = vadd.xlane.f32.xlu1 %v354_v3  ;;  %v3776_v14 = vld [vmem:[%s3730_s9 + $0x70] sm:$0xff]  ;;  %v3779_v15 = vld [vmem:[%s3730_s9 + $0x78] sm:$0xff]  ;;  %v3279_v17 = vld [vmem:[#allocation5] ss:$12 sps:$4 sm:$0xff]   ;;  %s2905_s23 = sshll.u32 (%p3661_p11), %s3485_s27, 4  ;;  %s2906_s29 = sshll.u32 (%p3661_p11), %s3489_s28, 7 }
  0x71   : > { %v3277_v16 = vld [vmem:[#allocation5 + $0x4] ss:$12 sps:$4 sm:$0xff]   ;;  %v3280_v18 = vld [vmem:[#allocation5 + $0x1c] ss:$12 sps:$4 sm:$0xff]   ;;  %s1941_s9 = sadd.s32 (%p3661_p11), %s2906_s29, %s2905_s23  ;;  %s4991_s14 = sld [smem:[#allocation19_spill]] (%p3661_p11) }
  0x72   : > { %v3282_v19 = vld [vmem:[#allocation5 + $0x8] ss:$12 sps:$4 sm:$0xff]   ;;  %775 = vmatprep.subr.bf16.mxu0 %v3277_v16  ;;  %v3283_v58 = vld [vmem:[#allocation5 + $0x18] ss:$12 sps:$4 sm:$0xff]   ;;  %s2907_s5 = sshll.u32 (%p3661_p11), %s1941_s9, 2 }
  0x73   : > { %776 = vmatpush1.bf16.msra.mxu0 %v3279_v17  ;;  %3026 = vmatprep.subr.bf16.mxu1 %v3282_v19 }
  0x74   : > { %377 = vadd.xlane.f32.xlu0 %v355_v4  ;;  %379 = vadd.xlane.f32.xlu1 %v356_v5 }
  0x75   : > { %777 = vmatprep.subr.bf16.mxu0 %v3280_v18  ;;  %3027 = vmatpush3.bf16.msra.mxu1 %v3282_v19  ;;  %v3288_v18 = vld [vmem:[#allocation5 + $0x4c] ss:$12 sps:$4 sm:$0xff]  }
  0x76   : > { %v3290_v19 = vld [vmem:[#allocation5 + $0x38] ss:$12 sps:$4 sm:$0xff]  }
  0x77   : > { %778 = vmatpush1.bf16.msra.mxu0 %v3283_v58  ;;  %s4758_s15 = scalar_lea.vmem (%p3661_p11), %s4991_s14, %s2907_s5 }
  0x78   : > { %381 = vadd.xlane.f32.xlu0 %v3747_v6  ;;  %383 = vadd.xlane.f32.xlu1 %v358_v7 }
  0x7c   : > { %385 = vadd.xlane.f32.xlu0 %v3751_v8  ;;  %387 = vadd.xlane.f32.xlu1 %v3754_v9 }
  0x80   : > { %389 = vadd.xlane.f32.xlu0 %v3760_v10  ;;  %391 = vadd.xlane.f32.xlu1 %v3763_v11 }
  0x84   : > { %393 = vadd.xlane.f32.xlu0 %v3768_v12  ;;  %395 = vadd.xlane.f32.xlu1 %v3771_v13 }
  0x88   : > { %397 = vadd.xlane.f32.xlu0 %v3776_v14  ;;  %399 = vadd.xlane.f32.xlu1 %v3779_v15 }
  0xf9   : > { %v370_v20 = vpop.xlane.xlu0 %369  ;;  %v374_v21 = vpop.xlane.xlu1 %373 }
  0xfa   : > { %v402_v22 = vmul.f32 0.0078125, %v370_v20  ;;  %v404_v23 = vmul.f32 0.0078125, %v374_v21 }
  0xfc   : > { %v3783_v24 = vsub.f32 %v351_v0, %v402_v22  ;;  %v3785_v25 = vsub.f32 %v353_v1, %v404_v23  ;;  %v3284_v0 = vld [vmem:[#allocation5 + $0x34] ss:$12 sps:$4 sm:$0xff]  }
  0xfd   : > { %v372_v26 = vpop.xlane.xlu0 %371  ;;  %v376_v27 = vpop.xlane.xlu1 %375  ;;  %v3286_v1 = vld [vmem:[#allocation5 + $0x20] ss:$12 sps:$4 sm:$0xff]   ;;  %779 = vmatprep.subr.bf16.mxu0 %v3284_v0  ;;  %v3291_v22 = vld [vmem:[#allocation5 + $0x48] ss:$12 sps:$4 sm:$0xff]  }
  0xfe   : > { %v403_v28 = vmul.f32 0.0078125, %v372_v26  ;;  %v434_v29 = vmul.f32 %v3783_v24, %v3783_v24  ;;  %v405_v30 = vmul.f32 0.0078125, %v376_v27  ;;  %v436_v31 = vmul.f32 %v3785_v25, %v3785_v25  ;;  %3028 = vmatprep.subr.bf16.mxu1 %v3286_v1 }
  0xff   : > { %3029 = vmatpush3.bf16.msra.mxu1 %v3286_v1 }
 0x100   : > { %450 = vadd.xlane.f32.xlu0 %v434_v29  ;;  %v3791_v32 = vsub.f32 %v352_v2, %v403_v28  ;;  %v3793_v33 = vsub.f32 %v354_v3, %v405_v30  ;;  %3030 = vmatprep.subr.bf16.mxu1 %v3290_v19  ;;  %v3292_v29 = vld [vmem:[#allocation5 + $0x64] ss:$12 sps:$4 sm:$0xff]  }
 0x101   : > { %v378_v34 = vpop.xlane.xlu0 %377  ;;  %v380_v35 = vpop.xlane.xlu1 %379  ;;  %v3294_v30 = vld [vmem:[#allocation5 + $0x50] ss:$12 sps:$4 sm:$0xff]  }
 0x102   : > { %v406_v36 = vmul.f32 0.0078125, %v378_v34  ;;  %v435_v37 = vmul.f32 %v3791_v32, %v3791_v32  ;;  %v407_v38 = vmul.f32 0.0078125, %v380_v35  ;;  %v437_v39 = vmul.f32 %v3793_v33, %v3793_v33  ;;  %v3296_v35 = vld [vmem:[#allocation5 + $0x7c] ss:$12 sps:$4 sm:$0xff]  }
 0x103   : > { %3031 = vmatpush3.bf16.msra.mxu1 %v3290_v19 }
 0x104   : > { %454 = vadd.xlane.f32.xlu0 %v436_v31  ;;  %452 = vadd.xlane.f32.xlu1 %v435_v37  ;;  %v3799_v40 = vsub.f32 %v355_v4, %v406_v36  ;;  %v3801_v41 = vsub.f32 %v356_v5, %v407_v38  ;;  %v3295_v31 = vld [vmem:[#allocation5 + $0x60] ss:$12 sps:$4 sm:$0xff]   ;;  %v3298_v36 = vld [vmem:[#allocation5 + $0x68] ss:$12 sps:$4 sm:$0xff]   ;;  %v3299_v37 = vld [vmem:[#allocation5 + $0x78] ss:$12 sps:$4 sm:$0xff]  }
 0x105   : > { %v382_v42 = vpop.xlane.xlu0 %381  ;;  %v384_v43 = vpop.xlane.xlu1 %383  ;;  %3032 = vmatprep.subr.bf16.mxu1 %v3294_v30  ;;  %v3302_v38 = vld [vmem:[#allocation5 + $0x80] ss:$12 sps:$4 sm:$0xff]  }
 0x106   : > { %v408_v44 = vmul.f32 0.0078125, %v382_v42  ;;  %v438_v45 = vmul.f32 %v3799_v40, %v3799_v40  ;;  %v409_v46 = vmul.f32 0.0078125, %v384_v43  ;;  %v439_v48 = vmul.f32 %v3801_v41, %v3801_v41  ;;  %v3304_v42 = vld [vmem:[#allocation5 + $0xac] ss:$12 sps:$4 sm:$0xff]  }
 0x107   : > { %3033 = vmatpush3.bf16.msra.mxu1 %v3294_v30  ;;  %v3306_v43 = vld [vmem:[#allocation5 + $0x98] ss:$12 sps:$4 sm:$0xff]  }
 0x108   : > { %456 = vadd.xlane.f32.xlu1 %v437_v39  ;;  %458 = vadd.xlane.f32.xlu0 %v438_v45  ;;  %v3805_v47 = vsub.f32 %v358_v7, %v409_v46  ;;  %v3810_v49 = vsub.f32 %v3747_v6, %v408_v44  ;;  %v3287_v7 = vld [vmem:[#allocation5 + $0x30] ss:$12 sps:$4 sm:$0xff]   ;;  %v3307_v44 = vld [vmem:[#allocation5 + $0xa8] ss:$12 sps:$4 sm:$0xff]   ;;  %v3509_v46 = vmov 0  }
 0x109   : > { %v386_v50 = vpop.xlane.xlu0 %385  ;;  %v388_v51 = vpop.xlane.xlu1 %387  ;;  %780 = vmatpush1.bf16.msra.mxu0 %v3287_v7  ;;  %3034 = vmatprep.subr.bf16.mxu1 %v3298_v36  ;;  %v3303_v39 = vld [vmem:[#allocation5 + $0x90] ss:$12 sps:$4 sm:$0xff]  }
 0x10a   : > { %v410_v52 = vmul.f32 0.0078125, %v386_v50  ;;  %v440_v53 = vmul.f32 %v3810_v49, %v3810_v49  ;;  %v411_v54 = vmul.f32 0.0078125, %v388_v51  ;;  %v441_v56 = vmul.f32 %v3805_v47, %v3805_v47  ;;  %781 = vmatprep.subr.bf16.mxu0 %v3288_v18  ;;  %v3308_v45 = vld [vmem:[#allocation5 + $0xb0] ss:$12 sps:$4 sm:$0xff]   ;;  %807 = vmatprep.mubr.bf16.mxu0 %v3509_v46 }
 0x10b   : > { %3035 = vmatpush3.bf16.msra.mxu1 %v3298_v36 }
 0x10c   : > { %460 = vadd.xlane.f32.xlu1 %v439_v48  ;;  %462 = vadd.xlane.f32.xlu0 %v440_v53  ;;  %v3815_v55 = vsub.f32 %v3754_v9, %v411_v54  ;;  %v3820_v57 = vsub.f32 %v3751_v8, %v410_v52 }
 0x10d   : > { %v390_v59 = vpop.xlane.xlu0 %389  ;;  %v392_v60 = vpop.xlane.xlu1 %391  ;;  %782 = vmatpush1.bf16.msra.mxu0 %v3291_v22  ;;  %3036 = vmatprep.subr.bf16.mxu1 %v3302_v38  ;;  %v3861_v22 = vld [vmem:[%s4951_s1] ss:$0 sm:$0xff] }
 0x10e   : > { %v412_v61 = vmul.f32 0.0078125, %v390_v59  ;;  %v442_v62 = vmul.f32 %v3820_v57, %v3820_v57  ;;  %v413_v63 = vmul.f32 0.0078125, %v392_v60  ;;  %v443_v3 = vmul.f32 %v3815_v55, %v3815_v55  ;;  %783 = vmatprep.subr.bf16.mxu0 %v3292_v29 }
 0x10f   : > { %3037 = vmatpush3.bf16.msra.mxu1 %v3302_v38 }
 0x110   : > { %464 = vadd.xlane.f32.xlu1 %v441_v56  ;;  %466 = vadd.xlane.f32.xlu0 %v442_v62  ;;  %v3825_v2 = vsub.f32 %v3763_v11, %v413_v63  ;;  %v3830_v4 = vsub.f32 %v3760_v10, %v412_v61 }
 0x111   : > { %v394_v5 = vpop.xlane.xlu0 %393  ;;  %v396_v6 = vpop.xlane.xlu1 %395  ;;  %784 = vmatpush1.bf16.msra.mxu0 %v3295_v31  ;;  %3038 = vmatprep.subr.bf16.mxu1 %v3306_v43 }
 0x112   : > { %v414_v8 = vmul.f32 0.0078125, %v394_v5  ;;  %v444_v9 = vmul.f32 %v3830_v4, %v3830_v4  ;;  %v415_v16 = vmul.f32 0.0078125, %v396_v6  ;;  %v445_v11 = vmul.f32 %v3825_v2, %v3825_v2  ;;  %785 = vmatprep.subr.bf16.mxu0 %v3296_v35  ;;  %v3868_v35 = vld [vmem:[%s4952_s2] ss:$0 sm:$0xff] }
 0x113   : > { %3039 = vmatpush3.bf16.msra.mxu1 %v3306_v43 }
 0x114   : > { %468 = vadd.xlane.f32.xlu1 %v443_v3  ;;  %470 = vadd.xlane.f32.xlu0 %v444_v9  ;;  %v3837_v10 = vsub.f32 %v3768_v12, %v414_v8  ;;  %v3840_v17 = vsub.f32 %v3771_v13, %v415_v16 }
 0x115   : > { %v398_v20 = vpop.xlane.xlu0 %397  ;;  %v400_v21 = vpop.xlane.xlu1 %399  ;;  %786 = vmatpush1.bf16.msra.mxu0 %v3299_v37  ;;  %3040 = vmatprep.subr.bf16.mxu1 %v3308_v45 }
 0x116   : > { %v416_v23 = vmul.f32 0.0078125, %v398_v20  ;;  %v446_v26 = vmul.f32 %v3837_v10, %v3837_v10  ;;  %v417_v27 = vmul.f32 0.0078125, %v400_v21  ;;  %v447_v13 = vmul.f32 %v3840_v17, %v3840_v17 }
 0x117   : > { %3041 = vmatpush3.bf16.msra.mxu1 %v3308_v45 }
 0x118   : > { %472 = vadd.xlane.f32.xlu1 %v445_v11  ;;  %474 = vadd.xlane.f32.xlu0 %v446_v26  ;;  %v3845_v12 = vsub.f32 %v3779_v15, %v417_v27  ;;  %v3850_v28 = vsub.f32 %v3776_v14, %v416_v23  ;;  %v3300_v14 = vld [vmem:[#allocation5 + $0x94] ss:$12 sps:$4 sm:$0xff]  }
 0x119   : > { %787 = vmatprep.subr.bf16.mxu0 %v3300_v14 }
 0x11a   : > { %v448_v34 = vmul.f32 %v3850_v28, %v3850_v28  ;;  %v449_v15 = vmul.f32 %v3845_v12, %v3845_v12  ;;  %788 = vmatpush1.bf16.msra.mxu0 %v3303_v39 }
 0x11b   : > { %789 = vmatprep.subr.bf16.mxu0 %v3304_v42 }
 0x11c   : > { %476 = vadd.xlane.f32.xlu1 %v447_v13  ;;  %478 = vadd.xlane.f32.xlu0 %v448_v34 }
 0x11e   : > { %790 = vmatpush1.bf16.msra.mxu0 %v3307_v44 }
 0x120   : > { %480 = vadd.xlane.f32.xlu1 %v449_v15 }
 0x18d   : > { %v451_v48 = vpop.xlane.xlu0 %450 }
 0x18e   : > { %v482_v50 = vmul.f32 0.0078125, %v451_v48 }
 0x190   : > { %v498_v51 = vadd.f32 1e-05, %v482_v50 }
 0x191   : > { %v453_v52 = vpop.xlane.xlu1 %452  ;;  %v455_v53 = vpop.xlane.xlu0 %454 }
 0x192   : > { %3309 = vrsqrt.f32 %v498_v51  ;;  %v483_v54 = vmul.f32 0.0078125, %v453_v52  ;;  %v484_v56 = vmul.f32 0.0078125, %v455_v53 }
 0x194   : > { %v499_v58 = vadd.f32 1e-05, %v483_v54  ;;  %v500_v59 = vadd.f32 1e-05, %v484_v56 }
 0x195   : > { %v457_v60 = vpop.xlane.xlu1 %456  ;;  %v459_v61 = vpop.xlane.xlu0 %458 }
 0x196   : > { %3311 = vrsqrt.f32 %v499_v58  ;;  %v485_v62 = vmul.f32 0.0078125, %v457_v60  ;;  %v486_v63 = vmul.f32 0.0078125, %v459_v61 }
 0x197   : > { %3313 = vrsqrt.f32 %v500_v59 }
 0x198   : > { %v501_v0 = vadd.f32 1e-05, %v485_v62  ;;  %v502_v1 = vadd.f32 1e-05, %v486_v63 }
 0x199   : > { %v461_v3 = vpop.xlane.xlu1 %460  ;;  %v463_v5 = vpop.xlane.xlu0 %462 }
 0x19a   : > { %3315 = vrsqrt.f32 %v501_v0  ;;  %v487_v6 = vmul.f32 0.0078125, %v461_v3  ;;  %v488_v7 = vmul.f32 0.0078125, %v463_v5 }
 0x19b   : > { %3317 = vrsqrt.f32 %v502_v1 }
 0x19c   : > { %v3310_v8 = vpop.eup %3309  ;;  %v503_v9 = vadd.f32 1e-05, %v487_v6  ;;  %v504_v16 = vadd.f32 1e-05, %v488_v7 }
 0x19d   : > { %v465_v11 = vpop.xlane.xlu1 %464  ;;  %v467_v18 = vpop.xlane.xlu0 %466  ;;  %v530_v19 = vmul.f32 %v3310_v8, %v3783_v24 }
 0x19e   : > { %3319 = vrsqrt.f32 %v503_v9  ;;  %v489_v20 = vmul.f32 0.0078125, %v465_v11  ;;  %v490_v21 = vmul.f32 0.0078125, %v467_v18 }
 0x19f   : > { %3321 = vrsqrt.f32 %v504_v16  ;;  %v552_v34 = vmul.f32 %v3861_v22, %v530_v19 }
 0x1a0   : > { %v3312_v23 = vpop.eup %3311  ;;  %v505_v26 = vadd.f32 1e-05, %v489_v20  ;;  %v506_v27 = vadd.f32 1e-05, %v490_v21 }
 0x1a1   : > { %v3314_v13 = vpop.eup %3313  ;;  %v469_v29 = vpop.xlane.xlu1 %468  ;;  %v531_v31 = vmul.f32 %v3312_v23, %v3791_v32  ;;  %v574_v45 = vadd.f32 %v3868_v35, %v552_v34 }
 0x1a2   : > { %v471_v30 = vpop.xlane.xlu0 %470  ;;  %3323 = vrsqrt.f32 %v505_v26  ;;  %v491_v24 = vmul.f32 0.0078125, %v469_v29  ;;  %v532_v36 = vmul.f32 %v3314_v13, %v3785_v25 }
 0x1a3   : > { %v492_v15 = vmul.f32 0.0078125, %v471_v30  ;;  %3325 = vrsqrt.f32 %v506_v27  ;;  %v553_v37 = vmul.f32 %v3861_v22, %v531_v31 }
 0x1a4   : > { %v3316_v14 = vpop.eup %3315  ;;  %v507_v38 = vadd.f32 1e-05, %v491_v24  ;;  %v554_v32 = vmul.f32 %v3861_v22, %v532_v36 }
 0x1a5   : > { %v508_v39 = vadd.f32 1e-05, %v492_v15  ;;  %v3318_v42 = vpop.eup %3317  ;;  %v473_v43 = vpop.xlane.xlu1 %472  ;;  %v575_v48 = vadd.f32 %v3868_v35, %v553_v37  ;;  %v533_v50 = vmul.f32 %v3316_v14, %v3793_v33 }
 0x1a6   : > { %v475_v44 = vpop.xlane.xlu0 %474  ;;  %3327 = vrsqrt.f32 %v507_v38  ;;  %v493_v51 = vmul.f32 0.0078125, %v473_v43  ;;  %v534_v54 = vmul.f32 %v3318_v42, %v3799_v40  ;;  %v576_v60 = vadd.f32 %v3868_v35, %v554_v32 }
 0x1a7   : > { %v494_v25 = vmul.f32 0.0078125, %v475_v44  ;;  %3329 = vrsqrt.f32 %v508_v39  ;;  %v590_v52 = vpack.c.bf16 %v575_v48, %v574_v45  ;;  %v555_v53 = vmul.f32 %v3861_v22, %v533_v50 }
 0x1a8   : > { %v3320_v56 = vpop.eup %3319  ;;  %v509_v58 = vadd.f32 1e-05, %v493_v51  ;;  %v556_v1 = vmul.f32 %v3861_v22, %v534_v54 }
 0x1a9   : > { %v510_v59 = vadd.f32 1e-05, %v494_v25  ;;  %v3322_v61 = vpop.eup %3321  ;;  %v477_v62 = vpop.xlane.xlu1 %476  ;;  %808 = vmatmul.mubr.bf16.vlgmr.msra.gmra.mrb[0].mxu0 %v590_v52  ;;  %3042 = vmatprep.mubr.bf16.mxu1 %v590_v52  ;;  %v577_v33 = vadd.f32 %v3868_v35, %v555_v53  ;;  %v535_v0 = vmul.f32 %v3320_v56, %v3801_v41 }
 0x1aa   : > { %v479_v63 = vpop.xlane.xlu0 %478  ;;  %3331 = vrsqrt.f32 %v509_v58  ;;  %v495_v3 = vmul.f32 0.0078125, %v477_v62  ;;  %817 = vmatprep.mubr.bf16.mxu0 %v3509_v46  ;;  %v536_v40 = vmul.f32 %v3322_v61, %v3810_v49  ;;  %v578_v19 = vadd.f32 %v3868_v35, %v556_v1 }
 0x1ab   : > { %v496_v5 = vmul.f32 0.0078125, %v479_v63  ;;  %3333 = vrsqrt.f32 %v510_v59  ;;  %v591_v6 = vpack.c.bf16 %v577_v33, %v576_v60  ;;  %v557_v7 = vmul.f32 %v3861_v22, %v535_v0 }
 0x1ac   : > { %v3324_v8 = vpop.eup %3323  ;;  %v511_v9 = vadd.f32 1e-05, %v495_v3  ;;  %v558_v11 = vmul.f32 %v3861_v22, %v536_v40 }
 0x1ad   : > { %v512_v16 = vadd.f32 1e-05, %v496_v5  ;;  %v3326_v18 = vpop.eup %3325  ;;  %v481_v41 = vpop.xlane.xlu1 %480  ;;  %3043 = vmatmul.mubr.bf16.vlgmr.msra.gmra.mrb[0].mxu1 %v591_v6  ;;  %v579_v20 = vadd.f32 %v3868_v35, %v557_v7  ;;  %v537_v21 = vmul.f32 %v3324_v8, %v3805_v47 }
 0x1ae   : > { %3335 = vrsqrt.f32 %v511_v9  ;;  %v497_v49 = vmul.f32 0.0078125, %v481_v41  ;;  %v538_v23 = vmul.f32 %v3326_v18, %v3820_v57  ;;  %v580_v30 = vadd.f32 %v3868_v35, %v558_v11 }
 0x1af   : > { %3337 = vrsqrt.f32 %v512_v16  ;;  %v592_v26 = vpack.c.bf16 %v579_v20, %v578_v19  ;;  %v559_v27 = vmul.f32 %v3861_v22, %v537_v21 }
 0x1b0   : > { %v3328_v13 = vpop.eup %3327  ;;  %v513_v29 = vadd.f32 1e-05, %v497_v49  ;;  %v560_v47 = vmul.f32 %v3861_v22, %v538_v23 }
 0x1b1   : > { %v3330_v31 = vpop.eup %3329  ;;  %818 = vmatmul.mubr.bf16.gmra.mrb[4].mxu0 %v591_v6  ;;  %3046 = vmatprep.mubr.bf16.mxu1 %v592_v26  ;;  %v581_v34 = vadd.f32 %v3868_v35, %v559_v27  ;;  %v539_v24 = vmul.f32 %v3328_v13, %v3815_v55 }
 0x1b2   : > { %3339 = vrsqrt.f32 %v513_v29  ;;  %827 = vmatprep.mubr.bf16.mxu0 %v3509_v46  ;;  %v540_v57 = vmul.f32 %v3330_v31, %v3830_v4  ;;  %v582_v39 = vadd.f32 %v3868_v35, %v560_v47 }
 0x1b3   : > { %v593_v15 = vpack.c.bf16 %v581_v34, %v580_v30  ;;  %v561_v36 = vmul.f32 %v3861_v22, %v539_v24 }
 0x1b4   : > { %v3332_v37 = vpop.eup %3331  ;;  %v562_v14 = vmul.f32 %v3861_v22, %v540_v57 }
 0x1b5   : > { %v3334_v38 = vpop.eup %3333  ;;  %3047 = vmatmul.mubr.bf16.gmra.mrb[4].mxu1 %v593_v15  ;;  %v583_v32 = vadd.f32 %v3868_v35, %v561_v36  ;;  %v541_v55 = vmul.f32 %v3332_v37, %v3825_v2 }
 0x1b6   : > { %v542_v42 = vmul.f32 %v3334_v38, %v3837_v10  ;;  %v584_v45 = vadd.f32 %v3868_v35, %v562_v14 }
 0x1b7   : > { %v594_v43 = vpack.c.bf16 %v583_v32, %v582_v39  ;;  %v563_v44 = vmul.f32 %v3861_v22, %v541_v55 }
 0x1b8   : > { %v3336_v4 = vpop.eup %3335  ;;  %v564_v25 = vmul.f32 %v3861_v22, %v542_v42 }
 0x1b9   : > { %v3338_v48 = vpop.eup %3337  ;;  %828 = vmatmul.mubr.bf16.gmra.mrb[8].mxu0 %v592_v26  ;;  %3050 = vmatprep.mubr.bf16.mxu1 %v594_v43  ;;  %v585_v50 = vadd.f32 %v3868_v35, %v563_v44  ;;  %v543_v51 = vmul.f32 %v3336_v4, %v3840_v17 }
 0x1ba   : > { %837 = vmatprep.mubr.bf16.mxu0 %v3509_v46  ;;  %v544_v2 = vmul.f32 %v3338_v48, %v3850_v28  ;;  %v586_v54 = vadd.f32 %v3868_v35, %v564_v25 }
 0x1bb   : > { %v595_v10 = vpack.c.bf16 %v585_v50, %v584_v45  ;;  %v565_v52 = vmul.f32 %v3861_v22, %v543_v51 }
 0x1bc   : > { %v3340_v53 = vpop.eup %3339  ;;  %v566_v59 = vmul.f32 %v3861_v22, %v544_v2 }
 0x1bd   : > { %3051 = vmatmul.mubr.bf16.gmra.mrb[8].mxu1 %v595_v10  ;;  %v587_v56 = vadd.f32 %v3868_v35, %v565_v52  ;;  %v545_v58 = vmul.f32 %v3340_v53, %v3845_v12  ;;  %v632_v12 = vlaneseq }
 0x1be   : > { %v588_v28 = vadd.f32 %v3868_v35, %v566_v59 }
 0x1bf   : > { %v596_v17 = vpack.c.bf16 %v587_v56, %v586_v54  ;;  %v567_v60 = vmul.f32 %v3861_v22, %v545_v58  ;;  %v633_v22 = vshrl.u32 %v632_v12, 7 }
 0x1c1   : > { %838 = vmatmul.mubr.bf16.gmra.mrb[12].mxu0 %v593_v15  ;;  %3054 = vmatprep.mubr.bf16.mxu1 %v596_v17  ;;  %v589_v61 = vadd.f32 %v3868_v35, %v567_v60  ;;  %v634_v63 = vsub.s32 0, %v633_v22  ;;  %v630_v35 = vld [vmem:[%s4954_s4] sm:$0x7]  ;;  %v638_v33 = vsub.s32 1, %v633_v22  ;;  %v642_v1 = vsub.s32 2, %v633_v22 }
 0x1c2   : > { %847 = vmatprep.mubr.bf16.mxu0 %v3509_v46 }
 0x1c3   : > { %v597_v62 = vpack.c.bf16 %v589_v61, %v588_v28  ;;  %v3925_v0 = vrot.slane %v630_v35, %v634_v63  ;;  %v3927_v5 = vrot.slane %v630_v35, %v638_v33 }
 0x1c5   : > { %3055 = vmatmul.mubr.bf16.gmra.mrb[12].mxu1 %v597_v62 }
 0x1c9   : > { %848 = vmatmul.mubr.bf16.gmra.mrb[16].mxu0 %v594_v43 }
 0x1ca   : > { %857 = vmatprep.mubr.bf16.mxu0 %v3509_v46 }
 0x1d1   : > { %858 = vmatmul.mubr.bf16.gmra.mrb[20].mxu0 %v595_v10 }
 0x1d2   : > { %867 = vmatprep.mubr.bf16.mxu0 %v3509_v46 }
 0x1d9   : > { %868 = vmatmul.mubr.bf16.gmra.mrb[24].mxu0 %v596_v17 }
 0x1da   : > { %877 = vmatprep.mubr.bf16.mxu0 %v3509_v46  ;;  %v3931_v46 = vrot.slane %v630_v35, %v642_v1 }
 0x1e1   : > { %878 = vmatmul.mubr.bf16.gmra.mrb[28].mxu0 %v597_v62 }
 0x27c   : > { %v809_v3 = vpop.f32.mrb[0].mxu0 }
 0x27d   : > { %v810_v40 = vadd.f32 %v809_v3, %v3925_v0  ;;  %v811_v6 = vpop.f32.mrb[1].mxu0 }
 0x27e   : > { %v813_v7 = vpop.f32.mrb[2].mxu0  ;;  %v3935_v11 = vadd.f32 %v811_v6, %v3927_v5 }
 0x27f   : > { %v985_v8 = vmul.f32 0.17677669, %v810_v40  ;;  %v814_v9 = vadd.f32 %v813_v7, %v3925_v0  ;;  %v815_v16 = vpop.f32.mrb[3].mxu0 }
 0x280   : > { %v3938_v18 = vadd.f32 %v815_v16, %v3927_v5  ;;  %v3044_v41 = vpop.f32.mrb[0].mxu1 }
 0x281   : > { %v3940_v19 = vpack.c.bf16 %v985_v8, %v985_v8  ;;  %v986_v20 = vmul.f32 0.17677669, %v814_v9  ;;  %v931_v21 = vadd.f32 %v3044_v41, %v3931_v46  ;;  %v922_v49 = vpop.f32.mrb[1].mxu1 }
 0x282   : > { %v923_v23 = vadd.f32 %v922_v49, %v3931_v46  ;;  %v3045_v26 = vpop.f32.mrb[2].mxu1  ;;  %v3157_v27 = vpack.i.bf16 %v3938_v18, %v3935_v11 }
 0x283   : > { %1066 = vst.msk [vmem:[%s3948_s6] sm:$0xf] %vm1065_vm0, %v3940_v19  ;;  %v3953_v13 = vpack.c.bf16 %v986_v20, %v986_v20  ;;  %v2937_v29 = vpack.c.bf16 %v931_v21, %v931_v21  ;;  %v934_v30 = vadd.f32 %v3045_v26, %v3931_v46  ;;  %v925_v31 = vpop.f32.mrb[3].mxu1 }
 0x284   : > { %v3956_v34 = vpack.c.bf16 %v923_v23, %v923_v23  ;;  %v926_v24 = vadd.f32 %v925_v31, %v3931_v46  ;;  %3158 = vrot.lane.b32.xlu1 %v3157_v27, %s3510_s10  ;;  %v819_v47 = vpop.f32.mrb[4].mxu0 }
 0x285   : > { %1067 = vst.msk [vmem:[%s3948_s6 + $0x4] sm:$0xf] %vm1065_vm0, %v3953_v13  ;;  %1200 = vst.msk [vmem:[%s3965_s17 + $0x8] sm:$0xf] %vm1065_vm0, %v2937_v29  ;;  %v3969_v57 = vpack.c.bf16 %v934_v30, %v934_v30  ;;  %v820_v15 = vadd.f32 %v819_v47, %v3925_v0  ;;  %1400 = vrot.lane.b32.xlu0 %v2937_v29, %s3510_s10  ;;  %v821_v36 = vpop.f32.mrb[5].mxu0 }
 0x286   : > { %1198 = vst.msk [vmem:[%s3965_s17] sm:$0xf] %vm1065_vm0, %v3956_v34  ;;  %v3976_v37 = vpack.c.bf16 %v926_v24, %v926_v24  ;;  %v823_v14 = vpop.f32.mrb[6].mxu0  ;;  %v4047_v9 = vadd.f32 %v821_v36, %v3927_v5 }
 0x287   : > { %1201 = vst.msk [vmem:[%s3965_s17 + $0xc] sm:$0xf] %vm1065_vm0, %v3969_v57  ;;  %v987_v38 = vmul.f32 0.17677669, %v820_v15  ;;  %v824_v39 = vadd.f32 %v823_v14, %v3925_v0  ;;  %v825_v32 = vpop.f32.mrb[7].mxu0 }
 0x288   : > { %1199 = vst.msk [vmem:[%s3965_s17 + $0x4] sm:$0xf] %vm1065_vm0, %v3976_v37  ;;  %3163 = vrot.lane.b32.xlu1 %v3157_v27, %s3511_s19  ;;  %v3048_v55 = vpop.f32.mrb[4].mxu1  ;;  %v4035_v33 = vadd.f32 %v825_v32, %v3927_v5 }
 0x289   : > { %v3986_v42 = vpack.c.bf16 %v987_v38, %v987_v38  ;;  %v988_v43 = vmul.f32 0.17677669, %v824_v39  ;;  %v947_v44 = vadd.f32 %v3048_v55, %v3931_v46  ;;  %1631 = vrot.lane.b32.xlu0 %v2937_v29, %s3511_s19  ;;  %v938_v4 = vpop.f32.mrb[5].mxu1 }
 0x28a   : > { %v939_v45 = vadd.f32 %v938_v4, %v3931_v46  ;;  %v3049_v48 = vpop.f32.mrb[6].mxu1 }
 0x28b   : > { %1068 = vst.msk [vmem:[%s3948_s6 + $0x8] sm:$0xf] %vm1065_vm0, %v3986_v42  ;;  %v3994_v50 = vpack.c.bf16 %v988_v43, %v988_v43  ;;  %v3996_v51 = vpack.c.bf16 %v947_v44, %v947_v44  ;;  %v950_v25 = vadd.f32 %v3049_v48, %v3931_v46  ;;  %v941_v2 = vpop.f32.mrb[7].mxu1 }
 0x28c   : > { %v3999_v10 = vpack.c.bf16 %v939_v45, %v939_v45  ;;  %v942_v52 = vadd.f32 %v941_v2, %v3931_v46  ;;  %1214 = vrot.lane.b32.xlu1 %v3940_v19, %s3510_s10  ;;  %v829_v53 = vpop.f32.mrb[8].mxu0 }
 0x28d   : > { %1069 = vst.msk [vmem:[%s3948_s6 + $0xc] sm:$0xf] %vm1065_vm0, %v3994_v50  ;;  %1204 = vst.msk [vmem:[%s3965_s17 + $0x18] sm:$0xf] %vm1065_vm0, %v3996_v51  ;;  %v4010_v54 = vpack.c.bf16 %v950_v25, %v950_v25  ;;  %v830_v56 = vadd.f32 %v829_v53, %v3925_v0  ;;  %3168 = vrot.lane.b32.xlu0 %v3157_v27, %s3512_s20  ;;  %v4014_v58 = vpop.f32.mrb[9].mxu0 }
 0x28e   : > { %1202 = vst.msk [vmem:[%s3965_s17 + $0x10] sm:$0xf] %vm1065_vm0, %v3999_v10  ;;  %v4019_v59 = vpack.c.bf16 %v942_v52, %v942_v52  ;;  %v833_v17 = vpop.f32.mrb[10].mxu0 }
 0x28f   : > { %1205 = vst.msk [vmem:[%s3965_s17 + $0x1c] sm:$0xf] %vm1065_vm0, %v4010_v54  ;;  %v989_v60 = vmul.f32 0.17677669, %v830_v56  ;;  %v834_v28 = vadd.f32 %v833_v17, %v3925_v0  ;;  %v835_v61 = vpop.f32.mrb[11].mxu0 }
 0x290   : > { %1203 = vst.msk [vmem:[%s3965_s17 + $0x14] sm:$0xf] %vm1065_vm0, %v4019_v59  ;;  %1461 = vrot.lane.b32.xlu1 %v3940_v19, %s3511_s19  ;;  %v3052_v62 = vpop.f32.mrb[8].mxu1 }
 0x291   : > { %v4030_v12 = vpack.c.bf16 %v989_v60, %v989_v60  ;;  %v990_v22 = vmul.f32 0.17677669, %v834_v28  ;;  %v963_v63 = vadd.f32 %v3052_v62, %v3931_v46  ;;  %1862 = vrot.lane.b32.xlu0 %v2937_v29, %s3512_s20  ;;  %v954_v35 = vpop.f32.mrb[9].mxu1  ;;  %v4074_v29 = vpack.i.bf16 %v4035_v33, %v4047_v9 }
 0x292   : > { %v955_v1 = vadd.f32 %v954_v35, %v3931_v46  ;;  %v3053_v3 = vpop.f32.mrb[10].mxu1 }
 0x293   : > { %1070 = vst.msk [vmem:[%s3948_s6 + $0x10] sm:$0xf] %vm1065_vm0, %v4030_v12  ;;  %v4041_v40 = vpack.c.bf16 %v990_v22, %v990_v22  ;;  %v4043_v6 = vpack.c.bf16 %v963_v63, %v963_v63  ;;  %v966_v7 = vadd.f32 %v3053_v3, %v3931_v46  ;;  %v957_v8 = vpop.f32.mrb[11].mxu1 }
 0x294   : > { %v4049_v16 = vpack.c.bf16 %v955_v1, %v955_v1  ;;  %v958_v41 = vadd.f32 %v957_v8, %v3931_v46  ;;  %1216 = vrot.lane.b32.xlu1 %v3953_v13, %s3510_s10  ;;  %v839_v20 = vpop.f32.mrb[12].mxu0 }
 0x295   : > { %1071 = vst.msk [vmem:[%s3948_s6 + $0x14] sm:$0xf] %vm1065_vm0, %v4041_v40  ;;  %1208 = vst.msk [vmem:[%s3965_s17 + $0x28] sm:$0xf] %vm1065_vm0, %v4043_v6  ;;  %v4060_v21 = vpack.c.bf16 %v966_v7, %v966_v7  ;;  %v840_v49 = vadd.f32 %v839_v20, %v3925_v0  ;;  %1396 = vrot.lane.b32.xlu0 %v3956_v34, %s3510_s10  ;;  %v4065_v23 = vpop.f32.mrb[13].mxu0 }
 0x296   : > { %1206 = vst.msk [vmem:[%s3965_s17 + $0x20] sm:$0xf] %vm1065_vm0, %v4049_v16  ;;  %v4070_v26 = vpack.c.bf16 %v958_v41, %v958_v41  ;;  %v843_v27 = vpop.f32.mrb[14].mxu0 }
 0x297   : > { %1209 = vst.msk [vmem:[%s3965_s17 + $0x2c] sm:$0xf] %vm1065_vm0, %v4060_v21  ;;  %v991_v30 = vmul.f32 0.17677669, %v840_v49  ;;  %v844_v31 = vadd.f32 %v843_v27, %v3925_v0  ;;  %v4080_v24 = vpop.f32.mrb[15].mxu0 }
 0x298   : > { %1207 = vst.msk [vmem:[%s3965_s17 + $0x24] sm:$0xf] %vm1065_vm0, %v4070_v26  ;;  %3173 = vrot.lane.b32.xlu1 %v4074_v29, %s3510_s10  ;;  %v3056_v47 = vpop.f32.mrb[12].mxu1 }
 0x299   : > { %v4087_v15 = vpack.c.bf16 %v991_v30, %v991_v30  ;;  %v992_v36 = vmul.f32 0.17677669, %v844_v31  ;;  %v979_v14 = vadd.f32 %v3056_v47, %v3931_v46  ;;  %1627 = vrot.lane.b32.xlu0 %v3956_v34, %s3511_s19  ;;  %v970_v38 = vpop.f32.mrb[13].mxu1 }
 0x29a   : > { %v971_v39 = vadd.f32 %v970_v38, %v3931_v46  ;;  %v3057_v32 = vpop.f32.mrb[14].mxu1 }
 0x29b   : > { %1072 = vst.msk [vmem:[%s3948_s6 + $0x18] sm:$0xf] %vm1065_vm0, %v4087_v15  ;;  %v4096_v55 = vpack.c.bf16 %v992_v36, %v992_v36  ;;  %v4098_v43 = vpack.c.bf16 %v979_v14, %v979_v14  ;;  %v982_v44 = vadd.f32 %v3057_v32, %v3931_v46  ;;  %v973_v4 = vpop.f32.mrb[15].mxu1  ;;  %v4193_v32 = vadd.f32 %v4080_v24, %v3927_v5 }
 0x29c   : > { %v4101_v45 = vpack.c.bf16 %v971_v39, %v971_v39  ;;  %v974_v48 = vadd.f32 %v973_v4, %v3931_v46  ;;  %1218 = vrot.lane.b32.xlu1 %v3986_v42, %s3510_s10  ;;  %v849_v25 = vpop.f32.mrb[16].mxu0  ;;  %v4118_v46 = vadd.f32 %v835_v61, %v3927_v5  ;;  %v4134_v61 = vadd.f32 %v4014_v58, %v3927_v5 }
 0x29d   : > { %1073 = vst.msk [vmem:[%s3948_s6 + $0x1c] sm:$0xf] %vm1065_vm0, %v4096_v55  ;;  %1212 = vst.msk [vmem:[%s3965_s17 + $0x38] sm:$0xf] %vm1065_vm0, %v4098_v43  ;;  %v4112_v2 = vpack.c.bf16 %v982_v44, %v982_v44  ;;  %v850_v52 = vadd.f32 %v849_v25, %v3925_v0  ;;  %1692 = vrot.lane.b32.xlu0 %v3940_v19, %s3512_s20  ;;  %v851_v53 = vpop.f32.mrb[17].mxu0 }
 0x29e   : > { %1210 = vst.msk [vmem:[%s3965_s17 + $0x30] sm:$0xf] %vm1065_vm0, %v4101_v45  ;;  %v4123_v56 = vpack.c.bf16 %v974_v48, %v974_v48  ;;  %v4126_v17 = vadd.f32 %v851_v53, %v3927_v5  ;;  %v853_v60 = vpop.f32.mrb[18].mxu0  ;;  %v4150_v1 = vpack.i.bf16 %v4118_v46, %v4134_v61  ;;  %v4201_v53 = vadd.f32 %v4065_v23, %v3927_v5 }
 0x29f   : > { %1213 = vst.msk [vmem:[%s3965_s17 + $0x3c] sm:$0xf] %vm1065_vm0, %v4112_v2  ;;  %v993_v28 = vmul.f32 0.17677669, %v850_v52  ;;  %v854_v19 = vadd.f32 %v853_v60, %v3925_v0  ;;  %v855_v62 = vpop.f32.mrb[19].mxu0 }
 0x2a0   : > { %1211 = vst.msk [vmem:[%s3965_s17 + $0x34] sm:$0xf] %vm1065_vm0, %v4123_v56  ;;  %v4140_v22 = vadd.f32 %v855_v62, %v3927_v5  ;;  %1220 = vrot.lane.b32.xlu1 %v3994_v50, %s3510_s10 }
 0x2a1   : > { %v4144_v63 = vpack.c.bf16 %v993_v28, %v993_v28  ;;  %v994_v35 = vmul.f32 0.17677669, %v854_v19  ;;  %1858 = vrot.lane.b32.xlu0 %v3956_v34, %s3512_s20  ;;  %v4214_v28 = vpack.i.bf16 %v4193_v32, %v4201_v53 }
 0x2a3   : > { %1074 = vst.msk [vmem:[%s3948_s6 + $0x20] sm:$0xf] %vm1065_vm0, %v4144_v63  ;;  %v4155_v58 = vpack.c.bf16 %v994_v35, %v994_v35 }
 0x2a4   : > { %3188 = vrot.lane.b32.xlu1 %v4150_v1, %s3510_s10  ;;  %v859_v3 = vpop.f32.mrb[20].mxu0 }
 0x2a5   : > { %1075 = vst.msk [vmem:[%s3948_s6 + $0x24] sm:$0xf] %vm1065_vm0, %v4155_v58  ;;  %v860_v7 = vadd.f32 %v859_v3, %v3925_v0  ;;  %1402 = vrot.lane.b32.xlu0 %v3969_v57, %s3510_s10  ;;  %v861_v34 = vpop.f32.mrb[21].mxu0 }
 0x2a6   : > { %v4166_v8 = vadd.f32 %v861_v34, %v3927_v5  ;;  %v863_v41 = vpop.f32.mrb[22].mxu0 }
 0x2a7   : > { %v995_v20 = vmul.f32 0.17677669, %v860_v7  ;;  %v864_v49 = vadd.f32 %v863_v41, %v3925_v0  ;;  %v865_v27 = vpop.f32.mrb[23].mxu0 }
 0x2a8   : > { %v4170_v30 = vadd.f32 %v865_v27, %v3927_v5  ;;  %3193 = vrot.lane.b32.xlu1 %v4150_v1, %s3511_s19 }
 0x2a9   : > { %v4174_v31 = vpack.c.bf16 %v995_v20, %v995_v20  ;;  %v996_v47 = vmul.f32 0.17677669, %v864_v49  ;;  %1633 = vrot.lane.b32.xlu0 %v3969_v57, %s3511_s19 }
 0x2ab   : > { %1076 = vst.msk [vmem:[%s3948_s6 + $0x28] sm:$0xf] %vm1065_vm0, %v4174_v31  ;;  %v4181_v36 = vpack.c.bf16 %v996_v47, %v996_v47 }
 0x2ac   : > { %1222 = vrot.lane.b32.xlu1 %v4030_v12, %s3510_s10  ;;  %v869_v14 = vpop.f32.mrb[24].mxu0 }
 0x2ad   : > { %1077 = vst.msk [vmem:[%s3948_s6 + $0x2c] sm:$0xf] %vm1065_vm0, %v4181_v36  ;;  %v870_v38 = vadd.f32 %v869_v14, %v3925_v0  ;;  %1864 = vrot.lane.b32.xlu0 %v3969_v57, %s3512_s20  ;;  %v871_v39 = vpop.f32.mrb[25].mxu0 }
 0x2ae   : > { %v4196_v44 = vadd.f32 %v871_v39, %v3927_v5  ;;  %v873_v4 = vpop.f32.mrb[26].mxu0 }
 0x2af   : > { %v997_v48 = vmul.f32 0.17677669, %v870_v38  ;;  %v874_v25 = vadd.f32 %v873_v4, %v3925_v0  ;;  %v875_v52 = vpop.f32.mrb[27].mxu0 }
 0x2b0   : > { %v4204_v57 = vadd.f32 %v875_v52, %v3927_v5  ;;  %1224 = vrot.lane.b32.xlu1 %v4041_v40, %s3510_s10 }
 0x2b1   : > { %v4208_v24 = vpack.c.bf16 %v997_v48, %v997_v48  ;;  %v998_v60 = vmul.f32 0.17677669, %v874_v25  ;;  %1398 = vrot.lane.b32.xlu0 %v3976_v37, %s3510_s10 }
 0x2b3   : > { %1078 = vst.msk [vmem:[%s3948_s6 + $0x30] sm:$0xf] %vm1065_vm0, %v4208_v24  ;;  %v4219_v23 = vpack.c.bf16 %v998_v60, %v998_v60 }
 0x2b4   : > { %3203 = vrot.lane.b32.xlu1 %v4214_v28, %s3510_s10  ;;  %v879_v19 = vpop.f32.mrb[28].mxu0 }
 0x2b5   : > { %1079 = vst.msk [vmem:[%s3948_s6 + $0x34] sm:$0xf] %vm1065_vm0, %v4219_v23  ;;  %v880_v62 = vadd.f32 %v879_v19, %v3925_v0  ;;  %1463 = vrot.lane.b32.xlu0 %v3953_v13, %s3511_s19  ;;  %v881_v35 = vpop.f32.mrb[29].mxu0 }
 0x2b6   : > { %v4230_v3 = vadd.f32 %v881_v35, %v3927_v5  ;;  %v883_v7 = vpop.f32.mrb[30].mxu0 }
 0x2b7   : > { %v999_v34 = vmul.f32 0.17677669, %v880_v62  ;;  %v884_v41 = vadd.f32 %v883_v7, %v3925_v0  ;;  %v885_v20 = vpop.f32.mrb[31].mxu0  ;;  %v4260_v0 = vpack.i.bf16 %v4140_v22, %v4126_v17 }
 0x2b8   : > { %v4234_v49 = vadd.f32 %v885_v20, %v3927_v5  ;;  %3213 = vrot.lane.b32.xlu1 %v4214_v28, %s3512_s20  ;;  %v4288_v5 = vpack.i.bf16 %v4170_v30, %v4166_v8 }
 0x2b9   : > { %v4238_v27 = vpack.c.bf16 %v999_v34, %v999_v34  ;;  %v1000_v47 = vmul.f32 0.17677669, %v884_v41  ;;  %1629 = vrot.lane.b32.xlu0 %v3976_v37, %s3511_s19 }
 0x2ba   : > { %v4348_v39 = vpack.i.bf16 %v4234_v49, %v4230_v3 }
 0x2bb   : > { %1080 = vst.msk [vmem:[%s3948_s6 + $0x38] sm:$0xf] %vm1065_vm0, %v4238_v27  ;;  %v4245_v14 = vpack.c.bf16 %v1000_v47, %v1000_v47 }
 0x2bc   : > { %1226 = vrot.lane.b32.xlu1 %v4087_v15, %s3510_s10 }
 0x2bd   : > { %1081 = vst.msk [vmem:[%s3948_s6 + $0x3c] sm:$0xf] %vm1065_vm0, %v4245_v14  ;;  %1694 = vrot.lane.b32.xlu0 %v3953_v13, %s3512_s20  ;;  %v4312_v13 = vpack.i.bf16 %v4204_v57, %v4196_v44 }
 0x2c0   : > { %1228 = vrot.lane.b32.xlu1 %v4096_v55, %s3510_s10 }
 0x2c1   : > { %1860 = vrot.lane.b32.xlu0 %v3976_v37, %s3512_s20 }
 0x2c4   : > { %3218 = vrot.lane.b32.xlu1 %v4260_v0, %s3510_s10 }
 0x2c5   : > { %1408 = vrot.lane.b32.xlu0 %v3996_v51, %s3510_s10 }
 0x2c8   : > { %3223 = vrot.lane.b32.xlu1 %v4260_v0, %s3511_s19 }
 0x2c9   : > { %3178 = vrot.lane.b32.xlu0 %v4074_v29, %s3511_s19 }
 0x2cc   : > { %1230 = vrot.lane.b32.xlu1 %v4144_v63, %s3510_s10 }
 0x2cd   : > { %1639 = vrot.lane.b32.xlu0 %v3996_v51, %s3511_s19 }
 0x2d0   : > { %1477 = vrot.lane.b32.xlu1 %v4144_v63, %s3511_s19 }
 0x2d1   : > { %3183 = vrot.lane.b32.xlu0 %v4074_v29, %s3512_s20 }
 0x2d4   : > { %1232 = vrot.lane.b32.xlu1 %v4155_v58, %s3510_s10 }
 0x2d5   : > { %1870 = vrot.lane.b32.xlu0 %v3996_v51, %s3512_s20 }
 0x2d8   : > { %1710 = vrot.lane.b32.xlu1 %v4155_v58, %s3512_s20 }
 0x2d9   : > { %1404 = vrot.lane.b32.xlu0 %v3999_v10, %s3510_s10 }
 0x2dc   : > { %3233 = vrot.lane.b32.xlu1 %v4288_v5, %s3510_s10 }
 0x2dd   : > { %1465 = vrot.lane.b32.xlu0 %v3986_v42, %s3511_s19 }
 0x2e0   : > { %3243 = vrot.lane.b32.xlu1 %v4288_v5, %s3512_s20 }
 0x2e1   : > { %1635 = vrot.lane.b32.xlu0 %v3999_v10, %s3511_s19 }
 0x2e4   : > { %1234 = vrot.lane.b32.xlu1 %v4174_v31, %s3510_s10 }
 0x2e5   : > { %1696 = vrot.lane.b32.xlu0 %v3986_v42, %s3512_s20 }
 0x2e8   : > { %1481 = vrot.lane.b32.xlu1 %v4174_v31, %s3511_s19 }
 0x2e9   : > { %1866 = vrot.lane.b32.xlu0 %v3999_v10, %s3512_s20 }
 0x2ec   : > { %1236 = vrot.lane.b32.xlu1 %v4181_v36, %s3510_s10 }
 0x2ed   : > { %1410 = vrot.lane.b32.xlu0 %v4010_v54, %s3510_s10 }
 0x2f0   : > { %3248 = vrot.lane.b32.xlu1 %v4312_v13, %s3510_s10 }
 0x2f1   : > { %1641 = vrot.lane.b32.xlu0 %v4010_v54, %s3511_s19 }
 0x2f4   : > { %3253 = vrot.lane.b32.xlu1 %v4312_v13, %s3511_s19 }
 0x2f5   : > { %1872 = vrot.lane.b32.xlu0 %v4010_v54, %s3512_s20 }
 0x2f6   : > { %v4322_v37 = vpop.permute.xlu1 %3158 }
 0x2f7   : > { %v1401_v42 = vpop.permute.xlu0 %1400 }
 0x2f8   : > { %2808 = vst.msk [vmem:[%s3965_s17 + $0x48] sm:$0xf] %vm1065_vm0, %v1401_v42  ;;  %1238 = vrot.lane.b32.xlu1 %v4208_v24, %s3510_s10 }
 0x2f9   : > { %1406 = vrot.lane.b32.xlu0 %v4019_v59, %s3510_s10 }
 0x2fa   : > { %v4330_v51 = vpop.permute.xlu1 %3163 }
 0x2fb   : > { %v1632_v10 = vpop.permute.xlu0 %1631 }
 0x2fc   : > { %2848 = vst.msk [vmem:[%s3965_s17 + $0x88] sm:$0xf] %vm1065_vm0, %v1632_v10  ;;  %1485 = vrot.lane.b32.xlu1 %v4208_v24, %s3511_s19 }
 0x2fd   : > { %1467 = vrot.lane.b32.xlu0 %v3994_v50, %s3511_s19 }
 0x2fe   : > { %v1215_v54 = vpop.permute.xlu1 %1214 }
 0x2ff   : > { %2782 = vst.msk [vmem:[%s3948_s6 + $0x40] sm:$0xf] %vm1065_vm0, %v1215_v54  ;;  %v4340_v29 = vpop.permute.xlu0 %3168 }
 0x300   : > { %1240 = vrot.lane.b32.xlu1 %v4219_v23, %s3510_s10 }
 0x301   : > { %1637 = vrot.lane.b32.xlu0 %v4019_v59, %s3511_s19 }
 0x302   : > { %v1462_v38 = vpop.permute.xlu1 %1461 }
 0x303   : > { %2822 = vst.msk [vmem:[%s3948_s6 + $0x80] sm:$0xf] %vm1065_vm0, %v1462_v38  ;;  %v1863_v4 = vpop.permute.xlu0 %1862 }
 0x304   : > { %2888 = vst.msk [vmem:[%s3965_s17 + $0xc8] sm:$0xf] %vm1065_vm0, %v1863_v4  ;;  %3273 = vrot.lane.b32.xlu1 %v4348_v39, %s3512_s20 }
 0x305   : > { %1698 = vrot.lane.b32.xlu0 %v3994_v50, %s3512_s20 }
 0x306   : > { %v1217_v48 = vpop.permute.xlu1 %1216 }
 0x307   : > { %2783 = vst.msk [vmem:[%s3948_s6 + $0x44] sm:$0xf] %vm1065_vm0, %v1217_v48  ;;  %v1397_v25 = vpop.permute.xlu0 %1396 }
 0x308   : > { %2806 = vst.msk [vmem:[%s3965_s17 + $0x40] sm:$0xf] %vm1065_vm0, %v1397_v25  ;;  %1242 = vrot.lane.b32.xlu1 %v4238_v27, %s3510_s10 }
 0x309   : > { %1868 = vrot.lane.b32.xlu0 %v4019_v59, %s3512_s20 }
 0x30a   : > { %v4366_v52 = vpop.permute.xlu1 %3173 }
 0x30b   : > { %v1628_v60 = vpop.permute.xlu0 %1627 }
 0x30c   : > { %2846 = vst.msk [vmem:[%s3965_s17 + $0x80] sm:$0xf] %vm1065_vm0, %v1628_v60  ;;  %1489 = vrot.lane.b32.xlu1 %v4238_v27, %s3511_s19  ;;  %v3160_v60 = vunpack.i.l.bf16 %v4322_v37 }
 0x30d   : > { %1416 = vrot.lane.b32.xlu0 %v4043_v6, %s3510_s10 }
 0x30e   : > { %v1219_v50 = vpop.permute.xlu1 %1218 }
 0x30f   : > { %2784 = vst.msk [vmem:[%s3948_s6 + $0x48] sm:$0xf] %vm1065_vm0, %v1219_v50  ;;  %v1693_v19 = vpop.permute.xlu0 %1692 }
 0x310   : > { %2862 = vst.msk [vmem:[%s3948_s6 + $0xc0] sm:$0xf] %vm1065_vm0, %v1693_v19  ;;  %1244 = vrot.lane.b32.xlu1 %v4245_v14, %s3510_s10 }
 0x311   : > { %1647 = vrot.lane.b32.xlu0 %v4043_v6, %s3511_s19 }
 0x312   : > { %v1221_v59 = vpop.permute.xlu1 %1220 }
 0x313   : > { %2785 = vst.msk [vmem:[%s3948_s6 + $0x4c] sm:$0xf] %vm1065_vm0, %v1221_v59  ;;  %v1859_v62 = vpop.permute.xlu0 %1858  ;;  %v3161_v59 = vunpack.i.h.bf16 %v4322_v37 }
 0x314   : > { %2886 = vst.msk [vmem:[%s3965_s17 + $0xc0] sm:$0xf] %vm1065_vm0, %v1859_v62 }
 0x315   : > { %3198 = vrot.lane.b32.xlu0 %v4150_v1, %s3512_s20 }
 0x316   : > { %v4388_v35 = vpop.permute.xlu1 %3188 }
 0x317   : > { %v1403_v7 = vpop.permute.xlu0 %1402 }
 0x318   : > { %2809 = vst.msk [vmem:[%s3965_s17 + $0x4c] sm:$0xf] %vm1065_vm0, %v1403_v7 }
 0x319   : > { %1878 = vrot.lane.b32.xlu0 %v4043_v6, %s3512_s20 }
 0x31a   : > { %v4394_v34 = vpop.permute.xlu1 %3193 }
 0x31b   : > { %v1634_v41 = vpop.permute.xlu0 %1633 }
 0x31c   : > { %2849 = vst.msk [vmem:[%s3965_s17 + $0x8c] sm:$0xf] %vm1065_vm0, %v1634_v41  ;;  %v3175_v41 = vunpack.i.l.bf16 %v4366_v52 }
 0x31d   : > { %1412 = vrot.lane.b32.xlu0 %v4049_v16, %s3510_s10 }
 0x31e   : > { %v1223_v20 = vpop.permute.xlu1 %1222 }
 0x31f   : > { %2786 = vst.msk [vmem:[%s3948_s6 + $0x50] sm:$0xf] %vm1065_vm0, %v1223_v20  ;;  %v1865_v1 = vpop.permute.xlu0 %1864  ;;  %v3176_v20 = vunpack.i.h.bf16 %v4366_v52 }
 0x320   : > { %2889 = vst.msk [vmem:[%s3965_s17 + $0xcc] sm:$0xf] %vm1065_vm0, %v1865_v1 }
 0x321   : > { %1469 = vrot.lane.b32.xlu0 %v4030_v12, %s3511_s19 }
 0x322   : > { %v1225_v6 = vpop.permute.xlu1 %1224 }
 0x323   : > { %2787 = vst.msk [vmem:[%s3948_s6 + $0x54] sm:$0xf] %vm1065_vm0, %v1225_v6  ;;  %v1399_v47 = vpop.permute.xlu0 %1398 }
 0x324   : > { %2807 = vst.msk [vmem:[%s3965_s17 + $0x44] sm:$0xf] %vm1065_vm0, %v1399_v47  ;;  %v3190_v47 = vunpack.i.l.bf16 %v4388_v35 }
 0x325   : > { %1643 = vrot.lane.b32.xlu0 %v4049_v16, %s3511_s19 }
 0x326   : > { %v4412_v42 = vpop.permute.xlu1 %3203 }
 0x327   : > { %v1464_v10 = vpop.permute.xlu0 %1463 }
 0x328   : > { %2823 = vst.msk [vmem:[%s3948_s6 + $0x84] sm:$0xf] %vm1065_vm0, %v1464_v10 }
 0x329   : > { %1700 = vrot.lane.b32.xlu0 %v4030_v12, %s3512_s20 }
 0x32a   : > { %v4418_v54 = vpop.permute.xlu1 %3213 }
 0x32b   : > { %v1630_v38 = vpop.permute.xlu0 %1629 }
 0x32c   : > { %2847 = vst.msk [vmem:[%s3965_s17 + $0x84] sm:$0xf] %vm1065_vm0, %v1630_v38  ;;  %v3191_v38 = vunpack.i.h.bf16 %v4388_v35  ;;  %v3206_v35 = vunpack.i.h.bf16 %v4412_v42 }
 0x32d   : > { %1874 = vrot.lane.b32.xlu0 %v4049_v16, %s3512_s20 }
 0x32e   : > { %v1227_v4 = vpop.permute.xlu1 %1226 }
 0x32f   : > { %2788 = vst.msk [vmem:[%s3948_s6 + $0x58] sm:$0xf] %vm1065_vm0, %v1227_v4  ;;  %v1695_v48 = vpop.permute.xlu0 %1694 }
 0x330   : > { %2863 = vst.msk [vmem:[%s3948_s6 + $0xc4] sm:$0xf] %vm1065_vm0, %v1695_v48 }
 0x331   : > { %1418 = vrot.lane.b32.xlu0 %v4060_v21, %s3510_s10 }
 0x332   : > { %v1229_v25 = vpop.permute.xlu1 %1228 }
 0x333   : > { %2789 = vst.msk [vmem:[%s3948_s6 + $0x5c] sm:$0xf] %vm1065_vm0, %v1229_v25  ;;  %v1861_v12 = vpop.permute.xlu0 %1860  ;;  %v3205_v25 = vunpack.i.l.bf16 %v4412_v42 }
 0x334   : > { %2887 = vst.msk [vmem:[%s3965_s17 + $0xc4] sm:$0xf] %vm1065_vm0, %v1861_v12 }
 0x335   : > { %1649 = vrot.lane.b32.xlu0 %v4060_v21, %s3511_s19 }
 0x336   : > { %v3219_v16 = vpop.permute.xlu1 %3218 }
 0x337   : > { %v1409_v50 = vpop.permute.xlu0 %1408 }
 0x338   : > { %2812 = vst.msk [vmem:[%s3965_s17 + $0x58] sm:$0xf] %vm1065_vm0, %v1409_v50  ;;  %v3220_v50 = vunpack.i.l.bf16 %v3219_v16 }
 0x339   : > { %1880 = vrot.lane.b32.xlu0 %v4060_v21, %s3512_s20  ;;  %1343 = vxpose.xlu1.b32.start [1/16] (narrow) %v3160_v60, 32 }
 0x33a   : > { %v4441_v19 = vpop.permute.xlu1 %3223 }
 0x33b   : > { %v4444_v62 = vpop.permute.xlu0 %3178 }
 0x33d   : > { %1414 = vrot.lane.b32.xlu0 %v4070_v26, %s3510_s10  ;;  %1344 = vxpose.xlu1.b32.cont [2/16] (narrow) %v3161_v59, 32 }
 0x33e   : > { %v1231_v7 = vpop.permute.xlu1 %1230 }
 0x33f   : > { %2790 = vst.msk [vmem:[%s3948_s6 + $0x60] sm:$0xf] %vm1065_vm0, %v1231_v7  ;;  %v1640_v21 = vpop.permute.xlu0 %1639  ;;  %v3221_v7 = vunpack.i.h.bf16 %v3219_v16 }
 0x340   : > { %2852 = vst.msk [vmem:[%s3965_s17 + $0x98] sm:$0xf] %vm1065_vm0, %v1640_v21 }
 0x341   : > { %1471 = vrot.lane.b32.xlu0 %v4041_v40, %s3511_s19  ;;  %1345 = vxpose.xlu1.b32.cont [3/16] (narrow) %v3175_v41, 32 }
 0x342   : > { %v1478_v37 = vpop.permute.xlu1 %1477 }
 0x343   : > { %2830 = vst.msk [vmem:[%s3948_s6 + $0xa0] sm:$0xf] %vm1065_vm0, %v1478_v37  ;;  %v4458_v1 = vpop.permute.xlu0 %3183 }
 0x345   : > { %1346 = vxpose.xlu1.b32.cont [4/16] (narrow) %v3176_v20, 32  ;;  %1645 = vrot.lane.b32.xlu0 %v4070_v26, %s3511_s19 }
 0x346   : > { %v1233_v6 = vpop.permute.xlu1 %1232 }
 0x347   : > { %2791 = vst.msk [vmem:[%s3948_s6 + $0x64] sm:$0xf] %vm1065_vm0, %v1233_v6  ;;  %v1871_v10 = vpop.permute.xlu0 %1870 }
 0x348   : > { %2892 = vst.msk [vmem:[%s3965_s17 + $0xd8] sm:$0xf] %vm1065_vm0, %v1871_v10 }
 0x349   : > { %1347 = vxpose.xlu1.b32.cont [5/16] (narrow) %v3190_v47, 32  ;;  %1702 = vrot.lane.b32.xlu0 %v4041_v40, %s3512_s20 }
 0x34a   : > { %v1711_v52 = vpop.permute.xlu1 %1710 }
 0x34b   : > { %2871 = vst.msk [vmem:[%s3948_s6 + $0xe4] sm:$0xf] %vm1065_vm0, %v1711_v52  ;;  %v1405_v4 = vpop.permute.xlu0 %1404 }
 0x34c   : > { %2810 = vst.msk [vmem:[%s3965_s17 + $0x50] sm:$0xf] %vm1065_vm0, %v1405_v4 }
 0x34d   : > { %1348 = vxpose.xlu1.b32.cont [6/16] (narrow) %v3191_v38, 32  ;;  %1876 = vrot.lane.b32.xlu0 %v4070_v26, %s3512_s20 }
 0x34e   : > { %v3234_v48 = vpop.permute.xlu1 %3233 }
 0x34f   : > { %v1466_v12 = vpop.permute.xlu0 %1465  ;;  %v3235_v21 = vunpack.i.l.bf16 %v3234_v48  ;;  %v3236_v20 = vunpack.i.h.bf16 %v3234_v48 }
 0x350   : > { %2824 = vst.msk [vmem:[%s3948_s6 + $0x88] sm:$0xf] %vm1065_vm0, %v1466_v12 }
 0x351   : > { %1349 = vxpose.xlu1.b32.cont [7/16] (narrow) %v3205_v25, 32  ;;  %1424 = vrot.lane.b32.xlu0 %v4098_v43, %s3510_s10 }
 0x352   : > { %v4481_v40 = vpop.permute.xlu1 %3243 }
 0x353   : > { %v1636_v60 = vpop.permute.xlu0 %1635 }
 0x354   : > { %2850 = vst.msk [vmem:[%s3965_s17 + $0x90] sm:$0xf] %vm1065_vm0, %v1636_v60 }
 0x355   : > { %1350 = vxpose.xlu1.b32.cont [8/16] (narrow) %v3206_v35, 32  ;;  %3208 = vrot.lane.b32.xlu0 %v4214_v28, %s3511_s19 }
 0x356   : > { %v1235_v26 = vpop.permute.xlu1 %1234 }
 0x357   : > { %2792 = vst.msk [vmem:[%s3948_s6 + $0x68] sm:$0xf] %vm1065_vm0, %v1235_v26  ;;  %v1697_v59 = vpop.permute.xlu0 %1696 }
 0x358   : > { %2864 = vst.msk [vmem:[%s3948_s6 + $0xc8] sm:$0xf] %vm1065_vm0, %v1697_v59 }
 0x359   : > { %1351 = vxpose.xlu1.b32.cont [9/16] (narrow) %v3220_v50, 32  ;;  %1655 = vrot.lane.b32.xlu0 %v4098_v43, %s3511_s19 }
 0x35a   : > { %v1482_v42 = vpop.permute.xlu1 %1481 }
 0x35b   : > { %2832 = vst.msk [vmem:[%s3948_s6 + $0xa8] sm:$0xf] %vm1065_vm0, %v1482_v42  ;;  %v1867_v41 = vpop.permute.xlu0 %1866 }
 0x35c   : > { %2890 = vst.msk [vmem:[%s3965_s17 + $0xd0] sm:$0xf] %vm1065_vm0, %v1867_v41 }
 0x35d   : > { %1352 = vxpose.xlu1.b32.cont [10/16] (narrow) %v3221_v7, 32  ;;  %1886 = vrot.lane.b32.xlu0 %v4098_v43, %s3512_s20 }
 0x35e   : > { %v1237_v28 = vpop.permute.xlu1 %1236 }
 0x35f   : > { %2793 = vst.msk [vmem:[%s3948_s6 + $0x6c] sm:$0xf] %vm1065_vm0, %v1237_v28  ;;  %v1411_v37 = vpop.permute.xlu0 %1410 }
 0x360   : > { %2813 = vst.msk [vmem:[%s3965_s17 + $0x5c] sm:$0xf] %vm1065_vm0, %v1411_v37 }
 0x361   : > { %1353 = vxpose.xlu1.b32.cont [11/16] (narrow) %v3235_v21, 32  ;;  %1420 = vrot.lane.b32.xlu0 %v4101_v45, %s3510_s10 }
 0x362   : > { %v3249_v16 = vpop.permute.xlu1 %3248 }
 0x363   : > { %v1642_v6 = vpop.permute.xlu0 %1641  ;;  %v3250_v47 = vunpack.i.l.bf16 %v3249_v16  ;;  %v3251_v38 = vunpack.i.h.bf16 %v3249_v16 }
 0x364   : > { %2853 = vst.msk [vmem:[%s3965_s17 + $0x9c] sm:$0xf] %vm1065_vm0, %v1642_v6 }
 0x365   : > { %1354 = vxpose.xlu1.b32.cont [12/16] (narrow) %v3236_v20, 32  ;;  %1473 = vrot.lane.b32.xlu0 %v4087_v15, %s3511_s19 }
 0x366   : > { %v4510_v43 = vpop.permute.xlu1 %3253 }
 0x367   : > { %v1873_v10 = vpop.permute.xlu0 %1872 }
 0x368   : > { %2893 = vst.msk [vmem:[%s3965_s17 + $0xdc] sm:$0xf] %vm1065_vm0, %v1873_v10 }
 0x369   : > { %1355 = vxpose.xlu1.b32.cont [13/16] (narrow) %v3250_v47, 32  ;;  %1651 = vrot.lane.b32.xlu0 %v4101_v45, %s3511_s19 }
 0x36a   : > { %v1239_v52 = vpop.permute.xlu1 %1238 }
 0x36b   : > { %2794 = vst.msk [vmem:[%s3948_s6 + $0x70] sm:$0xf] %vm1065_vm0, %v1239_v52  ;;  %v1407_v4 = vpop.permute.xlu0 %1406 }
 0x36c   : > { %2811 = vst.msk [vmem:[%s3965_s17 + $0x54] sm:$0xf] %vm1065_vm0, %v1407_v4 }
 0x36d   : > { %1356 = vxpose.xlu1.b32.cont [14/16] (narrow) %v3251_v38, 32  ;;  %1704 = vrot.lane.b32.xlu0 %v4087_v15, %s3512_s20 }
 0x36e   : > { %v1486_v48 = vpop.permute.xlu1 %1485 }
 0x36f   : > { %2834 = vst.msk [vmem:[%s3948_s6 + $0xb0] sm:$0xf] %vm1065_vm0, %v1486_v48  ;;  %v1468_v25 = vpop.permute.xlu0 %1467 }
 0x370   : > { %2825 = vst.msk [vmem:[%s3948_s6 + $0x8c] sm:$0xf] %vm1065_vm0, %v1468_v25 }
 0x371   : > { %1882 = vrot.lane.b32.xlu0 %v4101_v45, %s3512_s20 }
 0x372   : > { %v1241_v12 = vpop.permute.xlu1 %1240 }
 0x373   : > { %2795 = vst.msk [vmem:[%s3948_s6 + $0x74] sm:$0xf] %vm1065_vm0, %v1241_v12  ;;  %v1638_v35 = vpop.permute.xlu0 %1637 }
 0x374   : > { %2851 = vst.msk [vmem:[%s3965_s17 + $0x94] sm:$0xf] %vm1065_vm0, %v1638_v35 }
 0x375   : > { %1426 = vrot.lane.b32.xlu0 %v4112_v2, %s3510_s10 }
 0x376   : > { %v4534_v15 = vpop.permute.xlu1 %3273 }
 0x377   : > { %v1699_v60 = vpop.permute.xlu0 %1698 }
 0x378   : > { %2865 = vst.msk [vmem:[%s3948_s6 + $0xcc] sm:$0xf] %vm1065_vm0, %v1699_v60 }
 0x379   : > { %1657 = vrot.lane.b32.xlu0 %v4112_v2, %s3511_s19 }
 0x37a   : > { %v1243_v45 = vpop.permute.xlu1 %1242 }
 0x37b   : > { %2796 = vst.msk [vmem:[%s3948_s6 + $0x78] sm:$0xf] %vm1065_vm0, %v1243_v45  ;;  %v1869_v26 = vpop.permute.xlu0 %1868 }
 0x37c   : > { %2891 = vst.msk [vmem:[%s3965_s17 + $0xd4] sm:$0xf] %vm1065_vm0, %v1869_v26 }
 0x37d   : > { %1422 = vrot.lane.b32.xlu0 %v4123_v56, %s3510_s10 }
 0x37e   : > { %v1490_v50 = vpop.permute.xlu1 %1489 }
 0x37f   : > { %2836 = vst.msk [vmem:[%s3948_s6 + $0xb8] sm:$0xf] %vm1065_vm0, %v1490_v50  ;;  %v1417_v59 = vpop.permute.xlu0 %1416  ;;  %v3166_v50 = vunpack.i.h.bf16 %v4330_v51 }
 0x380   : > { %2816 = vst.msk [vmem:[%s3965_s17 + $0x68] sm:$0xf] %vm1065_vm0, %v1417_v59  ;;  %v3180_v59 = vunpack.i.l.bf16 %v4444_v62 }
 0x381   : > { %1475 = vrot.lane.b32.xlu0 %v4096_v55, %s3511_s19 }
 0x382   : > { %v1245_v42 = vpop.permute.xlu1 %1244 }
 0x383   : > { %2797 = vst.msk [vmem:[%s3948_s6 + $0x7c] sm:$0xf] %vm1065_vm0, %v1245_v42  ;;  %v1648_v7 = vpop.permute.xlu0 %1647  ;;  %v3181_v42 = vunpack.i.h.bf16 %v4444_v62 }
 0x384   : > { %2856 = vst.msk [vmem:[%s3965_s17 + $0xa8] sm:$0xf] %vm1065_vm0, %v1648_v7  ;;  %v3195_v7 = vunpack.i.l.bf16 %v4394_v34 }
 0x385   : > { %1653 = vrot.lane.b32.xlu0 %v4123_v56, %s3511_s19 }
 0x387   : > { %v4558_v41 = vpop.permute.xlu0 %3198 }
 0x389   : > { %1706 = vrot.lane.b32.xlu0 %v4096_v55, %s3512_s20 }
 0x38b   : > { %v1879_v28 = vpop.permute.xlu0 %1878 }
 0x38c   : > { %2896 = vst.msk [vmem:[%s3965_s17 + $0xe8] sm:$0xf] %vm1065_vm0, %v1879_v28  ;;  %v3196_v28 = vunpack.i.h.bf16 %v4394_v34 }
 0x38d   : > { %1884 = vrot.lane.b32.xlu0 %v4123_v56, %s3512_s20 }
 0x38f   : > { %v1413_v21 = vpop.permute.xlu0 %1412 }
 0x390   : > { %2814 = vst.msk [vmem:[%s3965_s17 + $0x60] sm:$0xf] %vm1065_vm0, %v1413_v21  ;;  %v3225_v21 = vunpack.i.l.bf16 %v4441_v19 }
 0x391   : > { %3228 = vrot.lane.b32.xlu0 %v4260_v0, %s3512_s20 }
 0x393   : > { %v1470_v37 = vpop.permute.xlu0 %1469 }
 0x394   : > { %2826 = vst.msk [vmem:[%s3948_s6 + $0x90] sm:$0xf] %vm1065_vm0, %v1470_v37  ;;  %v3226_v37 = vunpack.i.h.bf16 %v4441_v19  ;;  %v3256_v19 = vunpack.i.h.bf16 %v4510_v43 }
 0x395   : > { %1708 = vrot.lane.b32.xlu0 %v4144_v63, %s3512_s20 }
 0x397   : > { %v1644_v55 = vpop.permute.xlu0 %1643 }
 0x398   : > { %2854 = vst.msk [vmem:[%s3965_s17 + $0xa0] sm:$0xf] %vm1065_vm0, %v1644_v55 }
 0x399   : > { %1479 = vrot.lane.b32.xlu0 %v4155_v58, %s3511_s19 }
 0x39b   : > { %v1701_v56 = vpop.permute.xlu0 %1700 }
 0x39c   : > { %2866 = vst.msk [vmem:[%s3948_s6 + $0xd0] sm:$0xf] %vm1065_vm0, %v1701_v56 }
 0x39d   : > { %3238 = vrot.lane.b32.xlu0 %v4288_v5, %s3511_s19 }
 0x39f   : > { %v1875_v0 = vpop.permute.xlu0 %1874 }
 0x3a0   : > { %2894 = vst.msk [vmem:[%s3965_s17 + $0xe0] sm:$0xf] %vm1065_vm0, %v1875_v0  ;;  %v3255_v0 = vunpack.i.l.bf16 %v4510_v43  ;;  %v3185_v43 = vunpack.i.l.bf16 %v4458_v1 }
 0x3a1   : > { %1712 = vrot.lane.b32.xlu0 %v4174_v31, %s3512_s20 }
 0x3a3   : > { %v1419_v63 = vpop.permute.xlu0 %1418 }
 0x3a4   : > { %2817 = vst.msk [vmem:[%s3965_s17 + $0x6c] sm:$0xf] %vm1065_vm0, %v1419_v63 }
 0x3a5   : > { %1483 = vrot.lane.b32.xlu0 %v4181_v36, %s3511_s19 }
 0x3a7   : > { %v1650_v58 = vpop.permute.xlu0 %1649 }
 0x3a8   : > { %2857 = vst.msk [vmem:[%s3965_s17 + $0xac] sm:$0xf] %vm1065_vm0, %v1650_v58 }
 0x3a9   : > { %1714 = vrot.lane.b32.xlu0 %v4181_v36, %s3512_s20 }
 0x3ab   : > { %v1881_v5 = vpop.permute.xlu0 %1880 }
 0x3ac   : > { %2897 = vst.msk [vmem:[%s3965_s17 + $0xec] sm:$0xf] %vm1065_vm0, %v1881_v5 }
 0x3ad   : > { %3258 = vrot.lane.b32.xlu0 %v4312_v13, %s3512_s20 }
 0x3af   : > { %v1415_v31 = vpop.permute.xlu0 %1414 }
 0x3b0   : > { %2815 = vst.msk [vmem:[%s3965_s17 + $0x64] sm:$0xf] %vm1065_vm0, %v1415_v31 }
 0x3b1   : > { %1716 = vrot.lane.b32.xlu0 %v4208_v24, %s3512_s20 }
 0x3b3   : > { %v1472_v16 = vpop.permute.xlu0 %1471 }
 0x3b4   : > { %2827 = vst.msk [vmem:[%s3948_s6 + $0x94] sm:$0xf] %vm1065_vm0, %v1472_v16 }
 0x3b5   : > { %1487 = vrot.lane.b32.xlu0 %v4219_v23, %s3511_s19 }
 0x3b7   : > { %v1646_v36 = vpop.permute.xlu0 %1645 }
 0x3b8   : > { %2855 = vst.msk [vmem:[%s3965_s17 + $0xa4] sm:$0xf] %vm1065_vm0, %v1646_v36  ;;  %v3170_v36 = vunpack.i.l.bf16 %v4340_v29 }
 0x3b9   : > { %1718 = vrot.lane.b32.xlu0 %v4219_v23, %s3512_s20 }
 0x3bb   : > { %v1703_v13 = vpop.permute.xlu0 %1702 }
 0x3bc   : > { %2867 = vst.msk [vmem:[%s3948_s6 + $0xd4] sm:$0xf] %vm1065_vm0, %v1703_v13 }
 0x3bd   : > { %3263 = vrot.lane.b32.xlu0 %v4348_v39, %s3510_s10 }
 0x3bf   : > { %v1877_v24 = vpop.permute.xlu0 %1876 }
 0x3c0   : > { %2895 = vst.msk [vmem:[%s3965_s17 + $0xe4] sm:$0xf] %vm1065_vm0, %v1877_v24  ;;  %v3171_v24 = vunpack.i.h.bf16 %v4340_v29  ;;  %v3215_v29 = vunpack.i.l.bf16 %v4418_v54 }
 0x3c1   : > { %3268 = vrot.lane.b32.xlu0 %v4348_v39, %s3511_s19 }
 0x3c3   : > { %v1425_v20 = vpop.permute.xlu0 %1424 }
 0x3c4   : > { %2820 = vst.msk [vmem:[%s3965_s17 + $0x78] sm:$0xf] %vm1065_vm0, %v1425_v20 }
 0x3c5   : > { %1720 = vrot.lane.b32.xlu0 %v4238_v27, %s3512_s20 }
 0x3c7   : > { %v4622_v23 = vpop.permute.xlu0 %3208 }
 0x3c8   : > { %v3211_v62 = vunpack.i.h.bf16 %v4622_v23 }
 0x3cb   : > { %v1656_v6 = vpop.permute.xlu0 %1655 }
 0x3cc   : > { %2860 = vst.msk [vmem:[%s3965_s17 + $0xb8] sm:$0xf] %vm1065_vm0, %v1656_v6 }
 0x3cf   : > { %v1887_v47 = vpop.permute.xlu0 %1886 }
 0x3d0   : > { %2900 = vst.msk [vmem:[%s3965_s17 + $0xf8] sm:$0xf] %vm1065_vm0, %v1887_v47  ;;  %v3186_v47 = vunpack.i.h.bf16 %v4458_v1 }
 0x3d3   : > { %v1421_v10 = vpop.permute.xlu0 %1420 }
 0x3d4   : > { %2818 = vst.msk [vmem:[%s3965_s17 + $0x70] sm:$0xf] %vm1065_vm0, %v1421_v10 }
 0x3d7   : > { %v1474_v39 = vpop.permute.xlu0 %1473 }
 0x3d8   : > { %2828 = vst.msk [vmem:[%s3948_s6 + $0x98] sm:$0xf] %vm1065_vm0, %v1474_v39 }
 0x3db   : > { %v1652_v52 = vpop.permute.xlu0 %1651 }
 0x3dc   : > { %2858 = vst.msk [vmem:[%s3965_s17 + $0xb0] sm:$0xf] %vm1065_vm0, %v1652_v52  ;;  %v3200_v52 = vunpack.i.l.bf16 %v4558_v41 }
 0x3df   : > { %v1705_v27 = vpop.permute.xlu0 %1704 }
 0x3e0   : > { %2868 = vst.msk [vmem:[%s3948_s6 + $0xd8] sm:$0xf] %vm1065_vm0, %v1705_v27  ;;  %v3201_v27 = vunpack.i.h.bf16 %v4558_v41  ;;  %v3246_v41 = vunpack.i.h.bf16 %v4481_v40 }
 0x3e3   : > { %1082 = vxpose.xlu0.b32.start [1/16] (narrow) %v3935_v11, 32  ;;  %v1883_v38 = vpop.permute.xlu0 %1882 }
 0x3e4   : > { %2898 = vst.msk [vmem:[%s3965_s17 + $0xf0] sm:$0xf] %vm1065_vm0, %v1883_v38  ;;  %v3216_v38 = vunpack.i.h.bf16 %v4418_v54 }
 0x3e7   : > { %1083 = vxpose.xlu0.b32.cont [2/16] (narrow) %v3938_v18, 32  ;;  %v1427_v4 = vpop.permute.xlu0 %1426 }
 0x3e8   : > { %2821 = vst.msk [vmem:[%s3965_s17 + $0x7c] sm:$0xf] %vm1065_vm0, %v1427_v4 }
 0x3eb   : > { %1084 = vxpose.xlu0.b32.cont [3/16] (narrow) %v4047_v9, 32  ;;  %v1658_v48 = vpop.permute.xlu0 %1657 }
 0x3ec   : > { %2861 = vst.msk [vmem:[%s3965_s17 + $0xbc] sm:$0xf] %vm1065_vm0, %v1658_v48  ;;  %v3245_v48 = vunpack.i.l.bf16 %v4481_v40 }
 0x3ef   : > { %1085 = vxpose.xlu0.b32.cont [4/16] (narrow) %v4035_v33, 32  ;;  %v1423_v25 = vpop.permute.xlu0 %1422 }
 0x3f0   : > { %2819 = vst.msk [vmem:[%s3965_s17 + $0x74] sm:$0xf] %vm1065_vm0, %v1423_v25 }
 0x3f3   : > { %1086 = vxpose.xlu0.b32.cont [5/16] (narrow) %v4134_v61, 32  ;;  %v1476_v11 = vpop.permute.xlu0 %1475 }
 0x3f4   : > { %2829 = vst.msk [vmem:[%s3948_s6 + $0x9c] sm:$0xf] %vm1065_vm0, %v1476_v11  ;;  %v3275_v11 = vunpack.i.l.bf16 %v4534_v15 }
 0x3f7   : > { %1087 = vxpose.xlu0.b32.cont [6/16] (narrow) %v4118_v46, 32  ;;  %v1654_v18 = vpop.permute.xlu0 %1653 }
 0x3f8   : > { %2859 = vst.msk [vmem:[%s3965_s17 + $0xb4] sm:$0xf] %vm1065_vm0, %v1654_v18  ;;  %v3276_v18 = vunpack.i.h.bf16 %v4534_v15 }
 0x3fb   : > { %1088 = vxpose.xlu0.b32.cont [7/16] (narrow) %v4201_v53, 32  ;;  %v1707_v9 = vpop.permute.xlu0 %1706 }
 0x3fc   : > { %2869 = vst.msk [vmem:[%s3948_s6 + $0xdc] sm:$0xf] %vm1065_vm0, %v1707_v9 }
 0x3ff   : > { %1089 = vxpose.xlu0.b32.cont [8/16] (narrow) %v4193_v32, 32  ;;  %v1885_v33 = vpop.permute.xlu0 %1884 }
 0x400   : > { %2899 = vst.msk [vmem:[%s3965_s17 + $0xf4] sm:$0xf] %vm1065_vm0, %v1885_v33 }
 0x403   : > { %1090 = vxpose.xlu0.b32.cont [9/16] (narrow) %v4126_v17, 32  ;;  %v4661_v61 = vpop.permute.xlu0 %3228 }
 0x404   : > { %v3230_v4 = vunpack.i.l.bf16 %v4661_v61  ;;  %v3231_v1 = vunpack.i.h.bf16 %v4661_v61 }
 0x407   : > { %1091 = vxpose.xlu0.b32.cont [10/16] (narrow) %v4140_v22, 32  ;;  %v1709_v46 = vpop.permute.xlu0 %1708 }
 0x408   : > { %2870 = vst.msk [vmem:[%s3948_s6 + $0xe0] sm:$0xf] %vm1065_vm0, %v1709_v46 }
 0x40b   : > { %1092 = vxpose.xlu0.b32.cont [11/16] (narrow) %v4166_v8, 32  ;;  %v1480_v53 = vpop.permute.xlu0 %1479 }
 0x40c   : > { %2831 = vst.msk [vmem:[%s3948_s6 + $0xa4] sm:$0xf] %vm1065_vm0, %v1480_v53 }
 0x40f   : > { %1093 = vxpose.xlu0.b32.cont [12/16] (narrow) %v4170_v30, 32  ;;  %v3239_v32 = vpop.permute.xlu0 %3238 }
 0x410   : > { %v3240_v34 = vunpack.i.l.bf16 %v3239_v32  ;;  %v3241_v55 = vunpack.i.h.bf16 %v3239_v32 }
 0x413   : > { %1094 = vxpose.xlu0.b32.cont [13/16] (narrow) %v4196_v44, 32  ;;  %v1713_v17 = vpop.permute.xlu0 %1712 }
 0x414   : > { %2872 = vst.msk [vmem:[%s3948_s6 + $0xe8] sm:$0xf] %vm1065_vm0, %v1713_v17 }
 0x417   : > { %1095 = vxpose.xlu0.b32.cont [14/16] (narrow) %v4204_v57, 32  ;;  %v1484_v22 = vpop.permute.xlu0 %1483 }
 0x418   : > { %2833 = vst.msk [vmem:[%s3948_s6 + $0xac] sm:$0xf] %vm1065_vm0, %v1484_v22 }
 0x41b   : > { %1096 = vxpose.xlu0.b32.cont [15/16] (narrow) %v4230_v3, 32  ;;  %v1715_v8 = vpop.permute.xlu0 %1714 }
 0x41c   : > { %2873 = vst.msk [vmem:[%s3948_s6 + $0xec] sm:$0xf] %vm1065_vm0, %v1715_v8 }
 0x41f   : > { %1097 = vxpose.xlu0.b32.end [16/16] (narrow) %v4234_v49, 32  ;;  %v4680_v30 = vpop.permute.xlu0 %3258  ;;  %v3165_v49 = vunpack.i.l.bf16 %v4330_v51  ;;  %v3210_v51 = vunpack.i.l.bf16 %v4622_v23 }
 0x420   : > { %v3260_v25 = vunpack.i.l.bf16 %v4680_v30  ;;  %v3261_v54 = vunpack.i.h.bf16 %v4680_v30 }
 0x423   : > { %v1717_v44 = vpop.permute.xlu0 %1716 }
 0x424   : > { %2874 = vst.msk [vmem:[%s3948_s6 + $0xf0] sm:$0xf] %vm1065_vm0, %v1717_v44 }
 0x427   : > { %v1488_v12 = vpop.permute.xlu0 %1487 }
 0x428   : > { %2835 = vst.msk [vmem:[%s3948_s6 + $0xb4] sm:$0xf] %vm1065_vm0, %v1488_v12 }
 0x42b   : > { %v1719_v57 = vpop.permute.xlu0 %1718 }
 0x42c   : > { %2875 = vst.msk [vmem:[%s3948_s6 + $0xf4] sm:$0xf] %vm1065_vm0, %v1719_v57 }
 0x42f   : > { %v3264_v35 = vpop.permute.xlu0 %3263 }
 0x430   : > { %v3265_v60 = vunpack.i.l.bf16 %v3264_v35  ;;  %v3266_v45 = vunpack.i.h.bf16 %v3264_v35  ;;  %v1959_v35 = vld [vmem:[%s3948_s6] sm:$0xff] (%p3661_p11)  }
 0x431   : > { %1960 = vst [vmem:[%s4758_s15] sm:$0xff] (%p3661_p11), %v1959_v35  }
 0x432   : > { %1357 = vxpose.xlu1.b32.cont [15/16] (narrow) %v3265_v60, 32  ;;  %v1963_v60 = vld [vmem:[%s3948_s6 + $0x8] sm:$0xff] (%p3661_p11)  }
 0x433   : > { %v3269_v3 = vpop.permute.xlu0 %3268  ;;  %1964 = vst [vmem:[%s4758_s15 + $0x8] sm:$0xff] (%p3661_p11), %v1963_v60  }
 0x434   : > { %v3270_v5 = vunpack.i.l.bf16 %v3269_v3  ;;  %v3271_v16 = vunpack.i.h.bf16 %v3269_v3  ;;  %v1967_v3 = vld [vmem:[%s3948_s6 + $0x10] sm:$0xff] (%p3661_p11)  }
 0x435   : > { %1968 = vst [vmem:[%s4758_s15 + $0x10] sm:$0xff] (%p3661_p11), %v1967_v3  }
 0x436   : > { %1358 = vxpose.xlu1.b32.end [16/16] (narrow) %v3266_v45, 32  ;;  %v1971_v45 = vld [vmem:[%s3948_s6 + $0x18] sm:$0xff] (%p3661_p11)  }
 0x437   : > { %v1721_v26 = vpop.permute.xlu0 %1720  ;;  %1972 = vst [vmem:[%s4758_s15 + $0x18] sm:$0xff] (%p3661_p11), %v1971_v45  }
 0x438   : > { %2876 = vst.msk [vmem:[%s3948_s6 + $0xf8] sm:$0xf] %vm1065_vm0, %v1721_v26  ;;  %v1975_v26 = vld [vmem:[%s3948_s6 + $0x20] sm:$0xff] (%p3661_p11)  }
 0x439   : > { %1976 = vst [vmem:[%s4758_s15 + $0x20] sm:$0xff] (%p3661_p11), %v1975_v26  }
 0x43a   : > { %1574 = vxpose.xlu1.b32.start [1/16] (narrow) %v3165_v49, 32  ;;  %v1979_v49 = vld [vmem:[%s3948_s6 + $0x28] sm:$0xff] (%p3661_p11)  }
 0x43b   : > { %1980 = vst [vmem:[%s4758_s15 + $0x28] sm:$0xff] (%p3661_p11), %v1979_v49  }
 0x43e   : > { %1575 = vxpose.xlu1.b32.cont [2/16] (narrow) %v3166_v50, 32  ;;  %v1983_v50 = vld [vmem:[%s3948_s6 + $0x30] sm:$0xff] (%p3661_p11)  }
 0x43f   : > { %1984 = vst [vmem:[%s4758_s15 + $0x30] sm:$0xff] (%p3661_p11), %v1983_v50  }
 0x442   : > { %1576 = vxpose.xlu1.b32.cont [3/16] (narrow) %v3180_v59, 32  ;;  %v1987_v59 = vld [vmem:[%s3948_s6 + $0x38] sm:$0xff] (%p3661_p11)  }
 0x443   : > { %1988 = vst [vmem:[%s4758_s15 + $0x38] sm:$0xff] (%p3661_p11), %v1987_v59  }
 0x446   : > { %1577 = vxpose.xlu1.b32.cont [4/16] (narrow) %v3181_v42, 32  ;;  %v1991_v42 = vld [vmem:[%s3948_s6 + $0x40] sm:$0xff] (%p3661_p11)  }
 0x447   : > { %1992 = vst [vmem:[%s4758_s15 + $0x80] sm:$0xff] (%p3661_p11), %v1991_v42  }
 0x448   : > { %1491 = vrot.lane.b32.xlu0 %v4245_v14, %s3511_s19 }
 0x44a   : > { %1578 = vxpose.xlu1.b32.cont [5/16] (narrow) %v3195_v7, 32  ;;  %v1995_v7 = vld [vmem:[%s3948_s6 + $0x48] sm:$0xff] (%p3661_p11)  }
 0x44b   : > { %1996 = vst [vmem:[%s4758_s15 + $0x88] sm:$0xff] (%p3661_p11), %v1995_v7  }
 0x44c   : > { %1722 = vrot.lane.b32.xlu0 %v4245_v14, %s3512_s20 }
 0x44e   : > { %1579 = vxpose.xlu1.b32.cont [6/16] (narrow) %v3196_v28, 32  ;;  %v1999_v28 = vld [vmem:[%s3948_s6 + $0x50] sm:$0xff] (%p3661_p11)  }
 0x44f   : > { %2000 = vst [vmem:[%s4758_s15 + $0x90] sm:$0xff] (%p3661_p11), %v1999_v28  }
 0x450   : > { %1888 = vrot.lane.b32.xlu0 %v4112_v2, %s3512_s20 }
 0x452   : > { %1580 = vxpose.xlu1.b32.cont [7/16] (narrow) %v3210_v51, 32  ;;  %v2003_v51 = vld [vmem:[%s3948_s6 + $0x58] sm:$0xff] (%p3661_p11)  }
 0x453   : > { %2004 = vst [vmem:[%s4758_s15 + $0x98] sm:$0xff] (%p3661_p11), %v2003_v51  }
 0x456   : > { %1581 = vxpose.xlu1.b32.cont [8/16] (narrow) %v3211_v62, 32  ;;  %v2007_v62 = vld [vmem:[%s3948_s6 + $0x60] sm:$0xff] (%p3661_p11)  }
 0x457   : > { %2008 = vst [vmem:[%s4758_s15 + $0xa0] sm:$0xff] (%p3661_p11), %v2007_v62  }
 0x45a   : > { %1582 = vxpose.xlu1.b32.cont [9/16] (narrow) %v3225_v21, 32  ;;  %v2011_v21 = vld [vmem:[%s3948_s6 + $0x68] sm:$0xff] (%p3661_p11)  }
 0x45b   : > { %2012 = vst [vmem:[%s4758_s15 + $0xa8] sm:$0xff] (%p3661_p11), %v2011_v21  }
 0x45e   : > { %1583 = vxpose.xlu1.b32.cont [10/16] (narrow) %v3226_v37, 32  ;;  %v2015_v37 = vld [vmem:[%s3948_s6 + $0x70] sm:$0xff] (%p3661_p11)  }
 0x45f   : > { %2016 = vst [vmem:[%s4758_s15 + $0xb0] sm:$0xff] (%p3661_p11), %v2015_v37  }
 0x462   : > { %1584 = vxpose.xlu1.b32.cont [11/16] (narrow) %v3240_v34, 32  ;;  %v2019_v34 = vld [vmem:[%s3948_s6 + $0x78] sm:$0xff] (%p3661_p11)  }
 0x463   : > { %v1098_v14 = vpop.trf.xlu0  ;;  %2020 = vst [vmem:[%s4758_s15 + $0xb8] sm:$0xff] (%p3661_p11), %v2019_v34  }
 0x466   : > { %1585 = vxpose.xlu1.b32.cont [12/16] (narrow) %v3241_v55, 32  ;;  %v2027_v55 = vld [vmem:[%s3948_s6 + $0x88] sm:$0xff] (%p3661_p11)  }
 0x467   : > { %v1099_v56 = vpop.trf.xlu0  ;;  %2028 = vst [vmem:[%s4758_s15 + $0x108] sm:$0xff] (%p3661_p11), %v2027_v55  }
 0x468   : > { %v2966_v2 = vpack.c.bf16 %v1099_v56, %v1098_v14  ;;  %v2023_v14 = vld [vmem:[%s3948_s6 + $0x80] sm:$0xff] (%p3661_p11)   ;;  %v2031_v56 = vld [vmem:[%s3948_s6 + $0x90] sm:$0xff] (%p3661_p11)  }
 0x469   : > { %2024 = vst [vmem:[%s4758_s15 + $0x100] sm:$0xff] (%p3661_p11), %v2023_v14   ;;  %2032 = vst [vmem:[%s4758_s15 + $0x110] sm:$0xff] (%p3661_p11), %v2031_v56  }
 0x46a   : > { %1586 = vxpose.xlu1.b32.cont [13/16] (narrow) %v3255_v0, 32  ;;  %2967 = vst [vmem:[%s4708_s22] sm:$0xff] %v2966_v2   ;;  %v2035_v0 = vld [vmem:[%s3948_s6 + $0x98] sm:$0xff] (%p3661_p11)   ;;  %v2039_v2 = vld [vmem:[%s3948_s6 + $0xa0] sm:$0xff] (%p3661_p11)  }
 0x46b   : > { %v1100_v63 = vpop.trf.xlu0  ;;  %2036 = vst [vmem:[%s4758_s15 + $0x118] sm:$0xff] (%p3661_p11), %v2035_v0   ;;  %2040 = vst [vmem:[%s4758_s15 + $0x120] sm:$0xff] (%p3661_p11), %v2039_v2  }
 0x46e   : > { %1587 = vxpose.xlu1.b32.cont [14/16] (narrow) %v3256_v19, 32  ;;  %v2047_v19 = vld [vmem:[%s3948_s6 + $0xb0] sm:$0xff] (%p3661_p11)  }
 0x46f   : > { %v1101_v58 = vpop.trf.xlu0  ;;  %2048 = vst [vmem:[%s4758_s15 + $0x130] sm:$0xff] (%p3661_p11), %v2047_v19  }
 0x470   : > { %v2971_v31 = vpack.c.bf16 %v1101_v58, %v1100_v63  ;;  %v2043_v63 = vld [vmem:[%s3948_s6 + $0xa8] sm:$0xff] (%p3661_p11)  }
 0x471   : > { %2044 = vst [vmem:[%s4758_s15 + $0x128] sm:$0xff] (%p3661_p11), %v2043_v63  }
 0x472   : > { %1588 = vxpose.xlu1.b32.cont [15/16] (narrow) %v3270_v5, 32  ;;  %3003 = vst [vmem:[%s4708_s22 + $0x8] sm:$0xff] %v2971_v31   ;;  %v2055_v5 = vld [vmem:[%s3948_s6 + $0xc0] sm:$0xff] (%p3661_p11)   ;;  %v2059_v31 = vld [vmem:[%s3948_s6 + $0xc8] sm:$0xff] (%p3661_p11)  }
 0x473   : > { %2056 = vst [vmem:[%s4758_s15 + $0x180] sm:$0xff] (%p3661_p11), %v2055_v5   ;;  %2060 = vst [vmem:[%s4758_s15 + $0x188] sm:$0xff] (%p3661_p11), %v2059_v31  }
 0x476   : > { %1589 = vxpose.xlu1.b32.end [16/16] (narrow) %v3271_v16, 32  ;;  %v2063_v16 = vld [vmem:[%s3948_s6 + $0xd0] sm:$0xff] (%p3661_p11)  }
 0x477   : > { %2064 = vst [vmem:[%s4758_s15 + $0x190] sm:$0xff] (%p3661_p11), %v2063_v16  }
 0x47a   : > { %1805 = vxpose.xlu1.b32.start [1/16] (narrow) %v3170_v36, 32  ;;  %v1359_v13 = vpop.trf.xlu1  ;;  %v2067_v36 = vld [vmem:[%s3948_s6 + $0xd8] sm:$0xff] (%p3661_p11)  }
 0x47b   : > { %2068 = vst [vmem:[%s4758_s15 + $0x198] sm:$0xff] (%p3661_p11), %v2067_v36  }
 0x47e   : > { %1806 = vxpose.xlu1.b32.cont [2/16] (narrow) %v3171_v24, 32  ;;  %v1360_v20 = vpop.trf.xlu1  ;;  %v2075_v24 = vld [vmem:[%s3948_s6 + $0xe8] sm:$0xff] (%p3661_p11)  }
 0x47f   : > { %v2976_v23 = vpack.c.bf16 %v1360_v20, %v1359_v13  ;;  %v2071_v13 = vld [vmem:[%s3948_s6 + $0xe0] sm:$0xff] (%p3661_p11)   ;;  %2076 = vst [vmem:[%s4758_s15 + $0x1a8] sm:$0xff] (%p3661_p11), %v2075_v24   ;;  %v2079_v20 = vld [vmem:[%s3948_s6 + $0xf0] sm:$0xff] (%p3661_p11)  }
 0x480   : > { %2072 = vst [vmem:[%s4758_s15 + $0x1a0] sm:$0xff] (%p3661_p11), %v2071_v13   ;;  %2080 = vst [vmem:[%s4758_s15 + $0x1b0] sm:$0xff] (%p3661_p11), %v2079_v20  }
 0x481   : > { %3004 = vst [vmem:[%s4708_s22 + $0x10] sm:$0xff] %v2976_v23  }
 0x482   : > { %1807 = vxpose.xlu1.b32.cont [3/16] (narrow) %v3185_v43, 32  ;;  %v1361_v6 = vpop.trf.xlu1 }
 0x486   : > { %1808 = vxpose.xlu1.b32.cont [4/16] (narrow) %v3186_v47, 32  ;;  %v1362_v10 = vpop.trf.xlu1 }
 0x487   : > { %v2981_v39 = vpack.c.bf16 %v1362_v10, %v1361_v6 }
 0x489   : > { %3005 = vst [vmem:[%s4708_s22 + $0x18] sm:$0xff] %v2981_v39  }
 0x48a   : > { %1809 = vxpose.xlu1.b32.cont [5/16] (narrow) %v3200_v52, 32 }
 0x48e   : > { %1810 = vxpose.xlu1.b32.cont [6/16] (narrow) %v3201_v27, 32 }
 0x492   : > { %1811 = vxpose.xlu1.b32.cont [7/16] (narrow) %v3215_v29, 32 }
 0x496   : > { %1812 = vxpose.xlu1.b32.cont [8/16] (narrow) %v3216_v38, 32 }
 0x49a   : > { %1813 = vxpose.xlu1.b32.cont [9/16] (narrow) %v3230_v4, 32 }
 0x49e   : > { %1814 = vxpose.xlu1.b32.cont [10/16] (narrow) %v3231_v1, 32 }
 0x4a2   : > { %1815 = vxpose.xlu1.b32.cont [11/16] (narrow) %v3245_v48, 32 }
 0x4a6   : > { %1816 = vxpose.xlu1.b32.cont [12/16] (narrow) %v3246_v41, 32 }
 0x4aa   : > { %1817 = vxpose.xlu1.b32.cont [13/16] (narrow) %v3260_v25, 32 }
 0x4ae   : > { %1818 = vxpose.xlu1.b32.cont [14/16] (narrow) %v3261_v54, 32 }
 0x4b2   : > { %1819 = vxpose.xlu1.b32.cont [15/16] (narrow) %v3275_v11, 32 }
 0x4b6   : > { %1820 = vxpose.xlu1.b32.end [16/16] (narrow) %v3276_v18, 32 }
 0x4ba   : > { %v1492_v9 = vpop.permute.xlu0 %1491  ;;  %v1590_v33 = vpop.trf.xlu1 }
 0x4bb   : > { %2837 = vst.msk [vmem:[%s3948_s6 + $0xbc] sm:$0xf] %vm1065_vm0, %v1492_v9 }
 0x4be   : > { %v1723_v40 = vpop.permute.xlu0 %1722  ;;  %v1591_v61 = vpop.trf.xlu1 }
 0x4bf   : > { %2877 = vst.msk [vmem:[%s3948_s6 + $0xfc] sm:$0xf] %vm1065_vm0, %v1723_v40  ;;  %v2986_v46 = vpack.c.bf16 %v1591_v61, %v1590_v33 }
 0x4c1   : > { %3006 = vst [vmem:[%s4708_s22 + $0x20] sm:$0xff] %v2986_v46  }
 0x4c2   : > { %v1889_v53 = vpop.permute.xlu0 %1888  ;;  %v1592_v32 = vpop.trf.xlu1  ;;  %v2051_v58 = vld [vmem:[%s3948_s6 + $0xb8] sm:$0xff] (%p3661_p11)  }
 0x4c3   : > { %2901 = vst.msk [vmem:[%s3965_s17 + $0xfc] sm:$0xf] %vm1065_vm0, %v1889_v53  ;;  %2052 = vst [vmem:[%s4758_s15 + $0x138] sm:$0xff] (%p3661_p11), %v2051_v58  }
 0x4c6   : > { %v1593_v17 = vpop.trf.xlu1  ;;  %v2083_v23 = vld [vmem:[%s3948_s6 + $0xf8] sm:$0xff] (%p3661_p11)  }
 0x4c7   : > { %v2991_v15 = vpack.c.bf16 %v1593_v17, %v1592_v32  ;;  %2084 = vst [vmem:[%s4758_s15 + $0x1b8] sm:$0xff] (%p3661_p11), %v2083_v23  }
 0x4c9   : > { %3007 = vst [vmem:[%s4708_s22 + $0x28] sm:$0xff] %v2991_v15  }
 0x4fa   : > { %v1821_v22 = vpop.trf.xlu1 }
 0x4fe   : > { %v1822_v8 = vpop.trf.xlu1 }
 0x4ff   : > { %v2996_v30 = vpack.c.bf16 %v1822_v8, %v1821_v22 }
 0x501   : > { %3008 = vst [vmem:[%s4708_s22 + $0x30] sm:$0xff] %v2996_v30  }
 0x502   : > { %v1823_v44 = vpop.trf.xlu1 }
 0x503   : > { %1938 = sbr.rel (!%p3661_p11) target bundleno = 1290 (0x50a), region = 52 }
 0x506   : > { %v1824_v12 = vpop.trf.xlu1 }
 0x507   : > { %v3001_v57 = vpack.c.bf16 %v1824_v12, %v1823_v44 }
 0x509   : > { %3009 = vst [vmem:[%s4708_s22 + $0x38] sm:$0xff] %v3001_v57  }
 0x50a PF: > { %s2908_s16 = sshll.u32 %s3489_s28, 5  ;;  %s2245_s3 = sshll.u32 %s4708_s22, 4  ;;  %s4818_s3 = int_to_ptr.vmem [resolvable:$true] %s2245_s3 }
 0x50b   : > { %s2242_s10 = sadd.s32 %s3485_s27, %s2908_s16  ;;  %s4992_s29 = sld [smem:[#allocation20_spill]] }
 0x50c   : > { %s2909_s20 = sshll.u32 %s2242_s10, 6  ;;  %s3399_s5 = scalar_lea.vmem %s4818_s3, 1024 }
 0x50d   : > { %p3400_p6 = scmp.ne.s32.totalorder %s4818_s3, %s3399_s5  ;;  %s3513_s11 = smov [#allocation8]  }
 0x50e   : > { %s3403_s13 = sshll.u32 %s3513_s11, 4  ;;  %s3404_s13 = int_to_ptr.vmem [resolvable:$false] %s3403_s13 }
 0x50f   : > { %p3401_p8 = pnand %p3400_p6, %p3661_p11  ;;  %s3405_s22 = scalar_lea.vmem %s3404_s13, 2048 }
 0x510   : > { %p3406_p12 = scmp.lt.s32.totalorder %s4818_s3, %s3404_s13  ;;  %p3407_p13 = scmp.lt.s32.totalorder %s3405_s22, %s3399_s5 }
 0x511   : > { %s4993_s9 = smov %s4992_s29  ;;  %s4823_s6 = scalar_lea.hbm %s4992_s29, %s2909_s20 }
 0x512   : > { %p3402_p10 = pneg %p3401_p8  ;;  %p3408_p3 = por %p3407_p13, %p3406_p12 }
 0x514   : > { %p3409_p7 = pnand %p3408_p3, %p3402_p10 }
 0x516   : > { %3412 = shalt.err (!%p3409_p7)
}
 0x517   : > { %s3413_s14 = scalar_lea.hbm %s4823_s6, 1024  ;;  %s3417_s10 = scalar_lea.hbm %s4993_s9, 4096 }
 0x518   : > { %p3414_p1 = scmp.ne.s32.totalorder %s4823_s6, %s3413_s14  ;;  %p3418_p5 = scmp.lt.u32.totalorder %s4823_s6, %s4993_s9 }
 0x519   : > { %p3419_p9 = scmp.lt.u32.totalorder %s3417_s10, %s3413_s14  ;;  %p3421_p6 = scmp.lt.u32.totalorder %s3413_s14, %s4823_s6 }
 0x51a   : > { %p3415_p2 = pnand %p3414_p1, %p3661_p11 }
 0x51b   : > { %p3420_p0 = por %p3419_p9, %p3418_p5 }
 0x51c   : > { %p3416_p4 = pneg %p3415_p2 }
 0x51d   : > { %p3422_p8 = por %p3421_p6, %p3420_p0 }
 0x51f   : > { %p3423_p10 = pnand %p3422_p8, %p3416_p4 }
 0x521   : > { %3426 = shalt.err (!%p3423_p10)
}
 0x522   : > { %s3514_s23 = smov 128   ;;  %s3515_s29 = smov 4   ;;  %v2275_v43 = vld [vmem:[%s3965_s17] sm:$0xff] (%p3661_p11)   ;;  %v2279_v6 = vld [vmem:[%s3965_s17 + $0x8] sm:$0xff] (%p3661_p11)   ;;  %v2283_v47 = vld [vmem:[%s3965_s17 + $0x10] sm:$0xff] (%p3661_p11)  }
 0x523   : > { %3064 = dma.vmem_to_hbm [thread:$0]  (%p3661_p11), %s4818_s3, 1024, %s4823_s6, %s1928_s12, %s3511_s19, %s3514_s23, %s3515_s29  }
 0x524   : > { %2254 = sbr.rel (!%p3661_p11) target bundleno = 1340 (0x53c), region = 97  ;;  %s2910_s5 = sshll.u32 (%p3661_p11), %s3485_s27, 4  ;;  %v2287_v10 = vld [vmem:[%s3965_s17 + $0x18] sm:$0xff] (%p3661_p11)   ;;  %v2291_v39 = vld [vmem:[%s3965_s17 + $0x20] sm:$0xff] (%p3661_p11)   ;;  %v2295_v52 = vld [vmem:[%s3965_s17 + $0x28] sm:$0xff] (%p3661_p11)  }
 0x525   : > { %s2911_s7 = sshll.u32 (%p3661_p11), %s3489_s28, 7  ;;  %v2299_v27 = vld [vmem:[%s3965_s17 + $0x30] sm:$0xff] (%p3661_p11)   ;;  %v2303_v29 = vld [vmem:[%s3965_s17 + $0x38] sm:$0xff] (%p3661_p11)   ;;  %v2307_v38 = vld [vmem:[%s3965_s17 + $0x40] sm:$0xff] (%p3661_p11)   ;;  %s4994_s6 = sld [smem:[#allocation21_spill]] (%p3661_p11) }
 0x526   : > { %s2257_s18 = sadd.s32 (%p3661_p11), %s2911_s7, %s2910_s5  ;;  %v2311_v4 = vld [vmem:[%s3965_s17 + $0x48] sm:$0xff] (%p3661_p11)   ;;  %v2315_v1 = vld [vmem:[%s3965_s17 + $0x50] sm:$0xff] (%p3661_p11)   ;;  %v2319_v48 = vld [vmem:[%s3965_s17 + $0x58] sm:$0xff] (%p3661_p11)  }
 0x527   : > { %s2912_s19 = sshll.u32 (%p3661_p11), %s2257_s18, 2  ;;  %v2323_v41 = vld [vmem:[%s3965_s17 + $0x60] sm:$0xff] (%p3661_p11)   ;;  %v2327_v25 = vld [vmem:[%s3965_s17 + $0x68] sm:$0xff] (%p3661_p11)   ;;  %v2331_v54 = vld [vmem:[%s3965_s17 + $0x70] sm:$0xff] (%p3661_p11)  }
 0x528   : > { %v2335_v11 = vld [vmem:[%s3965_s17 + $0x78] sm:$0xff] (%p3661_p11)   ;;  %v2339_v18 = vld [vmem:[%s3965_s17 + $0x80] sm:$0xff] (%p3661_p11)   ;;  %v2343_v9 = vld [vmem:[%s3965_s17 + $0x88] sm:$0xff] (%p3661_p11)  }
 0x529   : > { %v2347_v33 = vld [vmem:[%s3965_s17 + $0x90] sm:$0xff] (%p3661_p11)   ;;  %v2351_v40 = vld [vmem:[%s3965_s17 + $0x98] sm:$0xff] (%p3661_p11)   ;;  %v2355_v61 = vld [vmem:[%s3965_s17 + $0xa0] sm:$0xff] (%p3661_p11)  }
 0x52a   : > { %v2359_v46 = vld [vmem:[%s3965_s17 + $0xa8] sm:$0xff] (%p3661_p11)   ;;  %v2363_v53 = vld [vmem:[%s3965_s17 + $0xb0] sm:$0xff] (%p3661_p11)   ;;  %v2367_v32 = vld [vmem:[%s3965_s17 + $0xb8] sm:$0xff] (%p3661_p11)  }
 0x52b   : > { %s4865_s11 = scalar_lea.vmem %s4994_s6, %s2912_s19  ;;  %v2371_v17 = vld [vmem:[%s3965_s17 + $0xc0] sm:$0xff]   ;;  %v2375_v15 = vld [vmem:[%s3965_s17 + $0xc8] sm:$0xff]   ;;  %v2379_v22 = vld [vmem:[%s3965_s17 + $0xd0] sm:$0xff]  }
 0x52c   : > { %2276 = vst [vmem:[%s4865_s11] sm:$0xff] %v2275_v43   ;;  %2280 = vst [vmem:[%s4865_s11 + $0x8] sm:$0xff] %v2279_v6   ;;  %v2383_v8 = vld [vmem:[%s3965_s17 + $0xd8] sm:$0xff]   ;;  %v2387_v30 = vld [vmem:[%s3965_s17 + $0xe0] sm:$0xff]  }
 0x52d   : > { %2284 = vst [vmem:[%s4865_s11 + $0x10] sm:$0xff] %v2283_v47   ;;  %2288 = vst [vmem:[%s4865_s11 + $0x18] sm:$0xff] %v2287_v10   ;;  %v2391_v44 = vld [vmem:[%s3965_s17 + $0xe8] sm:$0xff]   ;;  %v2395_v12 = vld [vmem:[%s3965_s17 + $0xf0] sm:$0xff]  }
 0x52e   : > { %2292 = vst [vmem:[%s4865_s11 + $0x20] sm:$0xff] %v2291_v39   ;;  %2296 = vst [vmem:[%s4865_s11 + $0x28] sm:$0xff] %v2295_v52   ;;  %v2399_v57 = vld [vmem:[%s3965_s17 + $0xf8] sm:$0xff]  }
 0x52f   : > { %2300 = vst [vmem:[%s4865_s11 + $0x30] sm:$0xff] %v2299_v27   ;;  %2304 = vst [vmem:[%s4865_s11 + $0x38] sm:$0xff] %v2303_v29  }
 0x530   : > { %2308 = vst [vmem:[%s4865_s11 + $0x80] sm:$0xff] %v2307_v38   ;;  %2312 = vst [vmem:[%s4865_s11 + $0x88] sm:$0xff] %v2311_v4  }
 0x531   : > { %2316 = vst [vmem:[%s4865_s11 + $0x90] sm:$0xff] %v2315_v1   ;;  %2320 = vst [vmem:[%s4865_s11 + $0x98] sm:$0xff] %v2319_v48  }
 0x532   : > { %2324 = vst [vmem:[%s4865_s11 + $0xa0] sm:$0xff] %v2323_v41   ;;  %2328 = vst [vmem:[%s4865_s11 + $0xa8] sm:$0xff] %v2327_v25  }
 0x533   : > { %2332 = vst [vmem:[%s4865_s11 + $0xb0] sm:$0xff] %v2331_v54   ;;  %2336 = vst [vmem:[%s4865_s11 + $0xb8] sm:$0xff] %v2335_v11  }
 0x534   : > { %2340 = vst [vmem:[%s4865_s11 + $0x100] sm:$0xff] %v2339_v18   ;;  %2344 = vst [vmem:[%s4865_s11 + $0x108] sm:$0xff] %v2343_v9  }
 0x535   : > { %2348 = vst [vmem:[%s4865_s11 + $0x110] sm:$0xff] %v2347_v33   ;;  %2352 = vst [vmem:[%s4865_s11 + $0x118] sm:$0xff] %v2351_v40  }
 0x536   : > { %2356 = vst [vmem:[%s4865_s11 + $0x120] sm:$0xff] %v2355_v61   ;;  %2360 = vst [vmem:[%s4865_s11 + $0x128] sm:$0xff] %v2359_v46  }
 0x537   : > { %2364 = vst [vmem:[%s4865_s11 + $0x130] sm:$0xff] %v2363_v53   ;;  %2368 = vst [vmem:[%s4865_s11 + $0x138] sm:$0xff] %v2367_v32  }
 0x538   : > { %2372 = vst [vmem:[%s4865_s11 + $0x180] sm:$0xff] %v2371_v17   ;;  %2376 = vst [vmem:[%s4865_s11 + $0x188] sm:$0xff] %v2375_v15  }
 0x539   : > { %2380 = vst [vmem:[%s4865_s11 + $0x190] sm:$0xff] %v2379_v22   ;;  %2384 = vst [vmem:[%s4865_s11 + $0x198] sm:$0xff] %v2383_v8  }
 0x53a   : > { %2388 = vst [vmem:[%s4865_s11 + $0x1a0] sm:$0xff] %v2387_v30   ;;  %2392 = vst [vmem:[%s4865_s11 + $0x1a8] sm:$0xff] %v2391_v44  }
 0x53b   : > { %2396 = vst [vmem:[%s4865_s11 + $0x1b0] sm:$0xff] %v2395_v12   ;;  %2400 = vst [vmem:[%s4865_s11 + $0x1b8] sm:$0xff] %v2399_v57  }
 0x53c PF: > { %s4995_s27 = sld [smem:[#allocation13_spill]]  ;;  %s4996_s28 = sld [smem:[#allocation15_spill]] }
 0x53d   : > { %p3081_p11 = scmp.ge.s32.totalorder %s3501_s8, 2 }
 0x542   : > { %s2566_s13 = sand.u32 1, %s4995_s27   ;;  %p4997_p12 = scmp.ne.s32.totalorder %s4996_s28, 0 }
 0x543   : > { %s2567_s22 = scalar_lea.sflag [#allocation4], %s2566_s13 }
 0x544   : > { %p3075_p13 = pnand %p3081_p11, %p4997_p12 }
 0x546   : > { %3468 = dma.done.wait (!%p3075_p13), %s2567_s22, 1024  }
 0x547   : > { %3470 = vsyncadd (!%p3075_p13), %s2567_s22, 4294966272  ;;  %s25_s8 = sadd.s32 1, %s3501_s8   ;;  %s4998_s17 = smov %s3678_s24 }
 0x548   : > { %p22_p3 = scmp.ge.s32.totalorder %s25_s8, 6   ;;  %s4999_s27 = sld [smem:[#allocation14_spill]] }
 0x549   : > { %s5000_s29 = sld [smem:[#allocation16_spill]]  ;;  %s5001_s14 = sld [smem:[#allocation17_spill]] }
 0x54a   : > { %s5002_s24 = smov %s3477_s25  ;;  %s5003_s25 = smov %s3481_s26 }
 0x54b   : > { %s5004_s26 = smov %s4998_s17  ;;  %s5005_s28 = smov %s3497_s30 }
 0x54c   :  { %24 = sbr.rel (!%p22_p3) target bundleno = 13 (0xd), region = 204 }
 0x54f   : > { %s5006_s30 = smov %s5001_s14 }
 0x553   :  { %2579 = vsyncpa [#allocation3], 1 }
 0x554   :  { %2581 = vsyncpa [#allocation3 + $0x1], 1 }
 0x555   :  { %2582 = vsyncpa [#allocation6], 1 }
 0x556   :  { %2583 = vsyncpa [#allocation4], 1 }
 0x557   :  { %2585 = vsyncpa [#allocation4 + $0x1], 1 }

</bundles_post_ra>
